<compile_context>
chip_gen: v7x
topology: tpu7x:2x2x1
jax: 0.10.0
libtpu: 0.0.40
codegen_flags: <defaults>
</compile_context>

<pallas_src>
import numpy as np

import jax
import jax.numpy as jnp
from jax.experimental import pallas as pl
from jax.experimental.pallas import tpu as pltpu


def _round_up(x, m):
    return ((x + m - 1) // m) * m


# --------------------------------------------------------------------------
# Kernel
# --------------------------------------------------------------------------
def _msa1_kernel(x_ref, wqkv_ref, bqkv_ref, wo_ref, bo_ref,
                 sel_ref, selT_ref, kprev_ref, knext_ref, out_ref):
    # x_ref block: (Bblk, L, nhid) -- Bblk fused sequences per grid step.
    Bblk, L, nhid = x_ref.shape
    BL = Bblk * L
    Dp = wo_ref.shape[0]                       # lane-aligned per-head width
    Hp = out_ref.shape[-1]                     # lane-dense output width
    cdt = wqkv_ref.dtype                       # matmul operand dtype (f32 / bf16)

    x = x_ref[...].reshape(BL, nhid)           # L % 8 == 0 -> free reshape

    # Fused 1x1-conv projections: one MXU push for Q|K|V (column blocks are
    # 128-lane aligned so the slices below are layout-free).
    qkv = jnp.dot(x.astype(cdt), wqkv_ref[...],
                  preferred_element_type=jnp.float32) + bqkv_ref[...]
    q = qkv[:, :Dp]
    k = qkv[:, Dp:2 * Dp]
    v = qkv[:, 2 * Dp:]

    # Sequence-boundary keep-masks (hoisted constants, shape (BL, 1)):
    # window shifts must not leak across sequence boundaries in the fused
    # (Bblk*L) layout.
    keep_prev = kprev_ref[...]
    keep_next = knext_ref[...]

    # F.unfold with kernel (3,1), padding (1,0) == zero-padded shifts along L.
    k_prev = pltpu.roll(k, shift=1, axis=0) * keep_prev       # k[l-1]
    k_next = pltpu.roll(k, shift=BL - 1, axis=0) * keep_next  # k[l+1]
    v_prev = pltpu.roll(v, shift=1, axis=0) * keep_prev
    v_next = pltpu.roll(v, shift=BL - 1, axis=0) * keep_next

    # Per-head scores for the 3 window offsets via a single selector matmul
    # (1/sqrt(head_dim) is folded into sel).
    qk_all = jnp.concatenate([q * k_prev, q * k, q * k_next], axis=0)  # (3BL, Dp)
    scores = jnp.dot(qk_all.astype(cdt), sel_ref[...],
                     preferred_element_type=jnp.float32)               # (3BL, nhead)
    s0, s1, s2 = scores[:BL], scores[BL:2 * BL], scores[2 * BL:]

    # Softmax over the 3 window positions (exact reciprocal -- accuracy).
    m = jnp.maximum(jnp.maximum(s0, s1), s2)
    e0 = jnp.exp(s0 - m)
    e1 = jnp.exp(s1 - m)
    e2 = jnp.exp(s2 - m)
    inv = pl.reciprocal(e0 + e1 + e2, approx=False)

    # Broadcast per-head alphas back to channels with a single matmul.
    e_all = jnp.concatenate([e0 * inv, e1 * inv, e2 * inv], axis=0)    # (3BL, nhead)
    alpha = jnp.dot(e_all.astype(cdt), selT_ref[...],
                    preferred_element_type=jnp.float32)                # (3BL, Dp)
    att = (alpha[:BL] * v_prev + alpha[BL:2 * BL] * v + alpha[2 * BL:] * v_next)

    # Output 1x1 conv, lane-dense (Hp) store.
    out = jnp.dot(att.astype(cdt), wo_ref[...],
                  preferred_element_type=jnp.float32) + bo_ref[...]    # (BL, Hp)
    out_ref[...] = out.reshape(Bblk, L, Hp).astype(out_ref.dtype)


# --------------------------------------------------------------------------
# Block / grid selection (generation-aware, per perf review)
# --------------------------------------------------------------------------
def _num_tensorcores_hint():
    """Single-TC 'lite' parts (v5e/v6e) vs. multi-TC parts (v4/v5p/v7x)."""
    try:
        kind = jax.devices()[0].device_kind.lower()
    except Exception:
        return 1
    if "lite" in kind or "v5e" in kind or "v6e" in kind:
        return 1
    return 2


def _target_grid_steps():
    # >=2 steps per TensorCore on multi-TC chips so the per-core DMA pipeline
    # can prefetch-next / writeback-previous; one maximal block on single-TC.
    return 4 if _num_tensorcores_hint() >= 2 else 1


def _pick_block_b(B, L, target_steps, max_rows=2048):
    """Largest divisor of B giving >= target_steps grid steps while keeping
    block_b * L (fused MXU rows) within the VMEM-friendly cap."""
    # TODO(synk): for prime B a padded-batch fallback would avoid B tiny steps.
    best = 1
    for cand in range(1, B + 1):
        if B % cand or cand * L > max_rows:
            continue
        if B // cand >= target_steps:
            best = cand
    return best


# --------------------------------------------------------------------------
# Wrapper
# --------------------------------------------------------------------------
def msa1_pallas(x_cl, params, nhead, head_dim, *, block_b=None,
                compute_dtype=jnp.float32):
    """x_cl: (B, L, nhid) channels-last. Returns (B, L, nhid) float32."""
    wq, bq, wk, bk, wv, bv, wo, bo = params
    B, L, nhid = x_cl.shape
    D = nhead * head_dim
    assert L % 8 == 0, "L must be a multiple of 8 (sublane tile); pad the sequence."

    # Normalize biases to (1, C) so (C,)-shaped biases don't mis-broadcast.
    bq, bk, bv, bo = (jnp.reshape(b, (1, -1)) for b in (bq, bk, bv, bo))

    f32 = jnp.float32
    Dp = _round_up(D, 128)       # lane-aligned per-projection column block
    Hp = _round_up(nhid, 128)    # lane-dense kernel output width

    # Fused, lane-aligned QKV projection weights/bias: (nhid, 3*Dp), (1, 3*Dp).
    w_qkv = jnp.zeros((nhid, 3 * Dp), f32)
    w_qkv = (w_qkv.at[:, 0:D].set(wq)
                   .at[:, Dp:Dp + D].set(wk)
                   .at[:, 2 * Dp:2 * Dp + D].set(wv))
    b_qkv = jnp.zeros((1, 3 * Dp), f32)
    b_qkv = (b_qkv.at[:, 0:D].set(bq)
                   .at[:, Dp:Dp + D].set(bk)
                   .at[:, 2 * Dp:2 * Dp + D].set(bv))

    # Padded output projection.
    wo_p = jnp.zeros((Dp, Hp), f32).at[:D, :nhid].set(wo)
    bo_p = jnp.zeros((1, Hp), f32).at[:, :nhid].set(bo)

    # Head-selector matrices, hoisted out of the kernel; the 1/sqrt(head_dim)
    # score scale is folded into `sel`.
    scale = 1.0 / float(np.sqrt(head_dim))
    head_of = np.arange(D) // head_dim
    sel_np = np.zeros((Dp, nhead), np.float32)
    sel_np[np.arange(D), head_of] = scale
    selT_np = np.zeros((nhead, Dp), np.float32)
    selT_np[head_of, np.arange(D)] = 1.0
    sel = jnp.asarray(sel_np)
    selT = jnp.asarray(selT_np)

    if block_b is None:
        block_b = _pick_block_b(B, L, _target_grid_steps())
    assert B % block_b == 0
    BL = block_b * L

    # Sequence-boundary keep-masks for the window shifts (hoisted).
    pos = np.arange(BL) % L
    keep_prev = jnp.asarray((pos != 0).astype(np.float32).reshape(BL, 1))
    keep_next = jnp.asarray((pos != L - 1).astype(np.float32).reshape(BL, 1))

    # Optional bf16 matmul operands: cast weights/selectors once here; the
    # kernel casts the activation operand at each dot site (f32 accumulation).
    cdt = compute_dtype
    w_qkv, wo_p, sel, selT = (a.astype(cdt) for a in (w_qkv, wo_p, sel, selT))

    # Explicit VMEM budget: weights + double-buffered x/out blocks + generous
    # intermediate allowance; never below the 32 MiB default, capped at 64 MiB.
    est = 4 * (w_qkv.size + b_qkv.size + wo_p.size + bo_p.size + sel.size
               + selT.size + 2 * BL
               + 2 * BL * nhid + 2 * BL * Hp + 16 * BL * Dp)
    vmem_limit = int(min(64 * 1024 * 1024, max(32 * 1024 * 1024, 2 * est)))

    def const_spec(arr):
        return pl.BlockSpec(arr.shape, lambda b: (0, 0))

    out_padded = pl.pallas_call(
        _msa1_kernel,
        out_shape=jax.ShapeDtypeStruct((B, L, Hp), jnp.float32),
        grid=(B // block_b,),
        in_specs=[
            pl.BlockSpec((block_b, L, nhid), lambda b: (b, 0, 0)),   # x
            const_spec(w_qkv), const_spec(b_qkv),                    # fused WQKV
            const_spec(wo_p), const_spec(bo_p),                      # WO
            const_spec(sel), const_spec(selT),                       # selectors
            const_spec(keep_prev), const_spec(keep_next),            # masks
        ],
        out_specs=pl.BlockSpec((block_b, L, Hp), lambda b: (b, 0, 0)),
        compiler_params=pltpu.CompilerParams(
            dimension_semantics=("parallel",),
            vmem_limit_bytes=vmem_limit),
    )(x_cl, w_qkv, b_qkv, wo_p, bo_p, sel, selT, keep_prev, keep_next)

    return out_padded[:, :, :nhid]


# --------------------------------------------------------------------------
# Pure-JAX reference matching the PyTorch _MSA1 forward (eval mode)
# --------------------------------------------------------------------------
def msa1_reference(x_nchw, params, nhead, head_dim):
    wq, bq, wk, bk, wv, bv, wo, bo = params
    bq, bk, bv, bo = (jnp.reshape(b, (1, -1)) for b in (bq, bk, bv, bo))
    B, nhid, L, _ = x_nchw.shape
    D = nhead * head_dim
    x = jnp.transpose(x_nchw[..., 0], (0, 2, 1))               # (B, L, nhid)
    q = x @ wq + bq
    k = x @ wk + bk
    v = x @ wv + bv
    qh = q.reshape(B, L, nhead, head_dim)
    kh = k.reshape(B, L, nhead, head_dim)
    vh = v.reshape(B, L, nhead, head_dim)
    pad = lambda a: jnp.pad(a, ((0, 0), (1, 1), (0, 0), (0, 0)))
    kp, vp = pad(kh), pad(vh)
    scores = jnp.stack([(qh * kp[:, u:u + L]).sum(-1) for u in range(3)],
                       axis=-1)                                 # (B, L, nhead, 3)
    alphas = jax.nn.softmax(scores / np.sqrt(head_dim), axis=-1)
    att = sum(alphas[..., u:u + 1] * vp[:, u:u + L] for u in range(3))
    att = att.reshape(B, L, D)
    ret = att @ wo + bo                                         # (B, L, nhid)
    return jnp.transpose(ret, (0, 2, 1))[..., None]             # (B, nhid, L, 1)


# --------------------------------------------------------------------------
# Demo / self-check
# --------------------------------------------------------------------------
if __name__ == "__main__":
    B, nhid, L = 16, 32, 16
    nhead, head_dim = 4, 8
    D = nhead * head_dim

    key = jax.random.PRNGKey(0)
    ks = jax.random.split(key, 9)
    # Deterministic synthetic params (Conv2d(Cout, Cin, 1, 1) stored as (Cin, Cout)).
    wq = jax.random.normal(ks[0], (nhid, D), jnp.float32) * 0.1
    bq = jax.random.normal(ks[1], (1, D), jnp.float32) * 0.1
    wk = jax.random.normal(ks[2], (nhid, D), jnp.float32) * 0.1
    bk = jax.random.normal(ks[3], (1, D), jnp.float32) * 0.1
    wv = jax.random.normal(ks[4], (nhid, D), jnp.float32) * 0.1
    bv = jax.random.normal(ks[5], (1, D), jnp.float32) * 0.1
    wo = jax.random.normal(ks[6], (D, nhid), jnp.float32) * 0.1
    bo = jax.random.normal(ks[7], (1, nhid), jnp.float32) * 0.1
    params = (wq, bq, wk, bk, wv, bv, wo, bo)

    # PyTorch-style NCHW input: (B, nhid, L, 1); kernel uses channels-last.
    x_nchw = jax.random.normal(ks[8], (B, nhid, L, 1), jnp.float32)
    x_cl = jnp.transpose(x_nchw[..., 0], (0, 2, 1))

    ref = msa1_reference(x_nchw, params, nhead, head_dim)

    # 1) f32 matmul operands + exact softmax reciprocal: tight check.
    out_cl = jax.block_until_ready(msa1_pallas(x_cl, params, nhead, head_dim))
    out_nchw = jnp.transpose(out_cl, (0, 2, 1))[..., None]
    np.testing.assert_allclose(np.asarray(out_nchw), np.asarray(ref),
                               rtol=1e-3, atol=1e-3)

    # 2) bf16 matmul operands (perf-review item): tolerance commensurate with
    #    bf16 rounding of the projection / selector matmuls.
    out_bf = jax.block_until_ready(
        msa1_pallas(x_cl, params, nhead, head_dim, compute_dtype=jnp.bfloat16))
    out_bf_nchw = jnp.transpose(out_bf, (0, 2, 1))[..., None]
    np.testing.assert_allclose(np.asarray(out_bf_nchw), np.asarray(ref),
                               rtol=3e-2, atol=3e-2)

    print("KERNEL_OK")
</pallas_src>

<mosaic_0001>
module attributes {stable_mosaic.version = 11 : i64} {
  func.func @_msa1_kernel(%arg0: i32, %arg1: memref<4x16x32xf32, #tpu.memory_space<vmem>>, %arg2: memref<32x384xf32, #tpu.memory_space<vmem>>, %arg3: memref<1x384xf32, #tpu.memory_space<vmem>>, %arg4: memref<128x128xf32, #tpu.memory_space<vmem>>, %arg5: memref<1x128xf32, #tpu.memory_space<vmem>>, %arg6: memref<128x4xf32, #tpu.memory_space<vmem>>, %arg7: memref<4x128xf32, #tpu.memory_space<vmem>>, %arg8: memref<64x1xf32, #tpu.memory_space<vmem>>, %arg9: memref<64x1xf32, #tpu.memory_space<vmem>>, %arg10: memref<4x16x128xf32, #tpu.memory_space<vmem>>) attributes {dimension_semantics = [#tpu.dimension_semantics<parallel>], iteration_bounds = array<i64: 4>, scalar_prefetch = 0 : i64, scratch_operands = 0 : i64, tpu.core_type = #tpu.core_type<tc>, window_params = [{transform_indices = @transform_0, window_bounds = array<i64: 4, 16, 32>}, {pipeline_mode = #tpu.pipeline_mode<synchronous>, transform_indices = @transform_1, window_bounds = array<i64: 32, 384>}, {pipeline_mode = #tpu.pipeline_mode<synchronous>, transform_indices = @transform_2, window_bounds = array<i64: 1, 384>}, {pipeline_mode = #tpu.pipeline_mode<synchronous>, transform_indices = @transform_3, window_bounds = array<i64: 128, 128>}, {pipeline_mode = #tpu.pipeline_mode<synchronous>, transform_indices = @transform_4, window_bounds = array<i64: 1, 128>}, {pipeline_mode = #tpu.pipeline_mode<synchronous>, transform_indices = @transform_5, window_bounds = array<i64: 128, 4>}, {pipeline_mode = #tpu.pipeline_mode<synchronous>, transform_indices = @transform_6, window_bounds = array<i64: 4, 128>}, {pipeline_mode = #tpu.pipeline_mode<synchronous>, transform_indices = @transform_7, window_bounds = array<i64: 64, 1>}, {pipeline_mode = #tpu.pipeline_mode<synchronous>, transform_indices = @transform_8, window_bounds = array<i64: 64, 1>}, {transform_indices = @transform_9, window_bounds = array<i64: 4, 16, 128>}]} {
    %c0 = arith.constant 0 : index
    %c0_0 = arith.constant 0 : index
    %c0_1 = arith.constant 0 : index
    %0 = vector.load %arg1[%c0, %c0_0, %c0_1] : memref<4x16x32xf32, #tpu.memory_space<vmem>>, vector<4x16x32xf32>
    %1 = vector.shape_cast %0 : vector<4x16x32xf32> to vector<64x32xf32>
    %c0_2 = arith.constant 0 : index
    %c0_3 = arith.constant 0 : index
    %2 = vector.load %arg2[%c0_2, %c0_3] : memref<32x384xf32, #tpu.memory_space<vmem>>, vector<32x384xf32>
    %cst = arith.constant dense<0.000000e+00> : vector<64x384xf32>
    %3 = tpu.matmul %1, %2, %cst {dimension_numbers = #tpu.dot_dimension_numbers<[1], [0], [0], [1], [0, 0, 1, 1], [], []>} : vector<64x32xf32>, vector<32x384xf32>, vector<64x384xf32> -> vector<64x384xf32>
    %c0_4 = arith.constant 0 : index
    %c0_5 = arith.constant 0 : index
    %4 = vector.load %arg3[%c0_4, %c0_5] : memref<1x384xf32, #tpu.memory_space<vmem>>, vector<1x384xf32>
    %5 = vector.broadcast %4 : vector<1x384xf32> to vector<64x384xf32>
    %6 = arith.addf %3, %5 : vector<64x384xf32>
    %7 = vector.extract_strided_slice %6 {offsets = [0, 0], sizes = [64, 128], strides = [1, 1]} : vector<64x384xf32> to vector<64x128xf32>
    %8 = vector.extract_strided_slice %6 {offsets = [0, 128], sizes = [64, 128], strides = [1, 1]} : vector<64x384xf32> to vector<64x128xf32>
    %9 = vector.extract_strided_slice %6 {offsets = [0, 256], sizes = [64, 128], strides = [1, 1]} : vector<64x384xf32> to vector<64x128xf32>
    %c0_6 = arith.constant 0 : index
    %c0_7 = arith.constant 0 : index
    %10 = vector.load %arg8[%c0_6, %c0_7] : memref<64x1xf32, #tpu.memory_space<vmem>>, vector<64x1xf32>
    %c0_8 = arith.constant 0 : index
    %c0_9 = arith.constant 0 : index
    %11 = vector.load %arg9[%c0_8, %c0_9] : memref<64x1xf32, #tpu.memory_space<vmem>>, vector<64x1xf32>
    %c1_i32 = arith.constant 1 : i32
    %12 = tpu.dynamic_rotate %8 by %c1_i32 dim 0 : vector<64x128xf32>, i32 -> vector<64x128xf32>
    %13 = vector.broadcast %10 : vector<64x1xf32> to vector<64x128xf32>
    %14 = arith.mulf %12, %13 : vector<64x128xf32>
    %c63_i32 = arith.constant 63 : i32
    %15 = tpu.dynamic_rotate %8 by %c63_i32 dim 0 : vector<64x128xf32>, i32 -> vector<64x128xf32>
    %16 = vector.broadcast %11 : vector<64x1xf32> to vector<64x128xf32>
    %17 = arith.mulf %15, %16 : vector<64x128xf32>
    %c1_i32_10 = arith.constant 1 : i32
    %18 = tpu.dynamic_rotate %9 by %c1_i32_10 dim 0 : vector<64x128xf32>, i32 -> vector<64x128xf32>
    %19 = vector.broadcast %10 : vector<64x1xf32> to vector<64x128xf32>
    %20 = arith.mulf %18, %19 : vector<64x128xf32>
    %c63_i32_11 = arith.constant 63 : i32
    %21 = tpu.dynamic_rotate %9 by %c63_i32_11 dim 0 : vector<64x128xf32>, i32 -> vector<64x128xf32>
    %22 = vector.broadcast %11 : vector<64x1xf32> to vector<64x128xf32>
    %23 = arith.mulf %21, %22 : vector<64x128xf32>
    %24 = arith.mulf %7, %14 : vector<64x128xf32>
    %25 = arith.mulf %7, %8 : vector<64x128xf32>
    %26 = arith.mulf %7, %17 : vector<64x128xf32>
    %27 = tpu.concatenate %24, %25, %26 in 0 : vector<64x128xf32>, vector<64x128xf32>, vector<64x128xf32> -> vector<192x128xf32>
    %c0_12 = arith.constant 0 : index
    %c0_13 = arith.constant 0 : index
    %28 = vector.load %arg6[%c0_12, %c0_13] : memref<128x4xf32, #tpu.memory_space<vmem>>, vector<128x4xf32>
    %cst_14 = arith.constant dense<0.000000e+00> : vector<192x4xf32>
    %29 = tpu.matmul %27, %28, %cst_14 {dimension_numbers = #tpu.dot_dimension_numbers<[1], [0], [0], [1], [0, 0, 1, 1], [], []>} : vector<192x128xf32>, vector<128x4xf32>, vector<192x4xf32> -> vector<192x4xf32>
    %30 = vector.extract_strided_slice %29 {offsets = [0, 0], sizes = [64, 4], strides = [1, 1]} : vector<192x4xf32> to vector<64x4xf32>
    %31 = vector.extract_strided_slice %29 {offsets = [64, 0], sizes = [64, 4], strides = [1, 1]} : vector<192x4xf32> to vector<64x4xf32>
    %32 = vector.extract_strided_slice %29 {offsets = [128, 0], sizes = [64, 4], strides = [1, 1]} : vector<192x4xf32> to vector<64x4xf32>
    %33 = arith.maximumf %30, %31 : vector<64x4xf32>
    %34 = arith.maximumf %33, %32 : vector<64x4xf32>
    %35 = arith.subf %30, %34 : vector<64x4xf32>
    %36 = math.exp %35 : vector<64x4xf32>
    %37 = arith.subf %31, %34 : vector<64x4xf32>
    %38 = math.exp %37 : vector<64x4xf32>
    %39 = arith.subf %32, %34 : vector<64x4xf32>
    %40 = math.exp %39 : vector<64x4xf32>
    %41 = arith.addf %36, %38 : vector<64x4xf32>
    %42 = arith.addf %41, %40 : vector<64x4xf32>
    %43 = tpu.reciprocal %42 : vector<64x4xf32> -> vector<64x4xf32>
    %44 = arith.mulf %36, %43 : vector<64x4xf32>
    %45 = arith.mulf %38, %43 : vector<64x4xf32>
    %46 = arith.mulf %40, %43 : vector<64x4xf32>
    %47 = tpu.concatenate %44, %45, %46 in 0 : vector<64x4xf32>, vector<64x4xf32>, vector<64x4xf32> -> vector<192x4xf32>
    %c0_15 = arith.constant 0 : index
    %c0_16 = arith.constant 0 : index
    %48 = vector.load %arg7[%c0_15, %c0_16] : memref<4x128xf32, #tpu.memory_space<vmem>>, vector<4x128xf32>
    %cst_17 = arith.constant dense<0.000000e+00> : vector<192x128xf32>
    %49 = tpu.matmul %47, %48, %cst_17 {dimension_numbers = #tpu.dot_dimension_numbers<[1], [0], [0], [1], [0, 0, 1, 1], [], []>} : vector<192x4xf32>, vector<4x128xf32>, vector<192x128xf32> -> vector<192x128xf32>
    %50 = vector.extract_strided_slice %49 {offsets = [0, 0], sizes = [64, 128], strides = [1, 1]} : vector<192x128xf32> to vector<64x128xf32>
    %51 = arith.mulf %50, %20 : vector<64x128xf32>
    %52 = vector.extract_strided_slice %49 {offsets = [64, 0], sizes = [64, 128], strides = [1, 1]} : vector<192x128xf32> to vector<64x128xf32>
    %53 = arith.mulf %52, %9 : vector<64x128xf32>
    %54 = arith.addf %51, %53 : vector<64x128xf32>
    %55 = vector.extract_strided_slice %49 {offsets = [128, 0], sizes = [64, 128], strides = [1, 1]} : vector<192x128xf32> to vector<64x128xf32>
    %56 = arith.mulf %55, %23 : vector<64x128xf32>
    %57 = arith.addf %54, %56 : vector<64x128xf32>
    %c0_18 = arith.constant 0 : index
    %c0_19 = arith.constant 0 : index
    %58 = vector.load %arg4[%c0_18, %c0_19] : memref<128x128xf32, #tpu.memory_space<vmem>>, vector<128x128xf32>
    %cst_20 = arith.constant dense<0.000000e+00> : vector<64x128xf32>
    %59 = tpu.matmul %57, %58, %cst_20 {dimension_numbers = #tpu.dot_dimension_numbers<[1], [0], [0], [1], [0, 0, 1, 1], [], []>} : vector<64x128xf32>, vector<128x128xf32>, vector<64x128xf32> -> vector<64x128xf32>
    %c0_21 = arith.constant 0 : index
    %c0_22 = arith.constant 0 : index
    %60 = vector.load %arg5[%c0_21, %c0_22] : memref<1x128xf32, #tpu.memory_space<vmem>>, vector<1x128xf32>
    %61 = vector.broadcast %60 : vector<1x128xf32> to vector<64x128xf32>
    %62 = arith.addf %59, %61 : vector<64x128xf32>
    %63 = vector.shape_cast %62 : vector<64x128xf32> to vector<4x16x128xf32>
    %c0_23 = arith.constant 0 : index
    %c0_24 = arith.constant 0 : index
    %c0_25 = arith.constant 0 : index
    %64 = vector.load %arg10[%c0_23, %c0_24, %c0_25] : memref<4x16x128xf32, #tpu.memory_space<vmem>>, vector<4x16x128xf32>
    tpu.vector_store %arg10[%c0_23, %c0_24, %c0_25], %63 {strides = array<i32>} : memref<4x16x128xf32, #tpu.memory_space<vmem>>, vector<4x16x128xf32>,
    return
  }
  func.func @transform_0(%arg0: i32) -> (i32, i32, i32) {
    %c0_i32 = arith.constant 0 : i32
    %c0_i32_0 = arith.constant 0 : i32
    %c0_i32_1 = arith.constant 0 : i32
    return %arg0, %c0_i32, %c0_i32_0 : i32, i32, i32
  }
  func.func @transform_1(%arg0: i32) -> (i32, i32) {
    %c0_i32 = arith.constant 0 : i32
    %c0_i32_0 = arith.constant 0 : i32
    %c0_i32_1 = arith.constant 0 : i32
    return %c0_i32, %c0_i32_0 : i32, i32
  }
  func.func @transform_2(%arg0: i32) -> (i32, i32) {
    %c0_i32 = arith.constant 0 : i32
    %c0_i32_0 = arith.constant 0 : i32
    %c0_i32_1 = arith.constant 0 : i32
    return %c0_i32, %c0_i32_0 : i32, i32
  }
  func.func @transform_3(%arg0: i32) -> (i32, i32) {
    %c0_i32 = arith.constant 0 : i32
    %c0_i32_0 = arith.constant 0 : i32
    %c0_i32_1 = arith.constant 0 : i32
    return %c0_i32, %c0_i32_0 : i32, i32
  }
  func.func @transform_4(%arg0: i32) -> (i32, i32) {
    %c0_i32 = arith.constant 0 : i32
    %c0_i32_0 = arith.constant 0 : i32
    %c0_i32_1 = arith.constant 0 : i32
    return %c0_i32, %c0_i32_0 : i32, i32
  }
  func.func @transform_5(%arg0: i32) -> (i32, i32) {
    %c0_i32 = arith.constant 0 : i32
    %c0_i32_0 = arith.constant 0 : i32
    %c0_i32_1 = arith.constant 0 : i32
    return %c0_i32, %c0_i32_0 : i32, i32
  }
  func.func @transform_6(%arg0: i32) -> (i32, i32) {
    %c0_i32 = arith.constant 0 : i32
    %c0_i32_0 = arith.constant 0 : i32
    %c0_i32_1 = arith.constant 0 : i32
    return %c0_i32, %c0_i32_0 : i32, i32
  }
  func.func @transform_7(%arg0: i32) -> (i32, i32) {
    %c0_i32 = arith.constant 0 : i32
    %c0_i32_0 = arith.constant 0 : i32
    %c0_i32_1 = arith.constant 0 : i32
    return %c0_i32, %c0_i32_0 : i32, i32
  }
  func.func @transform_8(%arg0: i32) -> (i32, i32) {
    %c0_i32 = arith.constant 0 : i32
    %c0_i32_0 = arith.constant 0 : i32
    %c0_i32_1 = arith.constant 0 : i32
    return %c0_i32, %c0_i32_0 : i32, i32
  }
  func.func @transform_9(%arg0: i32) -> (i32, i32, i32) {
    %c0_i32 = arith.constant 0 : i32
    %c0_i32_0 = arith.constant 0 : i32
    %c0_i32_1 = arith.constant 0 : i32
    return %arg0, %c0_i32, %c0_i32_0 : i32, i32, i32
  }
}

</mosaic_0001>

<bundles_post_ra>
// kernel: tpu_custom_call.1
= control target key start
LH: loop header
LB: loop body
LE: loop exit
PB: predicated region body
PF: predicated region fallthrough
CT: control target
= control target key end

     0   :  { %14 = vsyncpa [#allocation3], 0  ;;  %s3204_s0 = inlined_call_operand.vmem [shape: f32[16,16,32], index: 0, kind: input, shape index: {}]   ;;  %s3205_s1 = inlined_call_operand.hbm [shape: f32[32,384], index: 1, kind: input, shape index: {}]   ;;  %s3206_s2 = inlined_call_operand.vmem [shape: f32[1,384], index: 2, kind: input, shape index: {}]   ;;  %s3207_s3 = inlined_call_operand.hbm [shape: f32[128,128], index: 3, kind: input, shape index: {}]   ;;  %s3208_s4 = inlined_call_operand.vmem [shape: f32[1,128], index: 4, kind: input, shape index: {}]   ;;  %s3209_s5 = inlined_call_operand.vmem [shape: f32[128,4], index: 5, kind: input, shape index: {}]   ;;  %s3210_s6 = inlined_call_operand.vmem [shape: f32[4,128], index: 6, kind: input, shape index: {}]   ;;  %s3211_s7 = inlined_call_operand.vmem [shape: f32[64,1], index: 7, kind: input, shape index: {}]   ;;  %s3212_s8 = inlined_call_operand.vmem [shape: f32[64,1], index: 8, kind: input, shape index: {}]   ;;  %s3213_s9 = inlined_call_operand.hbm [shape: f32[16,16,128], index: 9, kind: output, shape index: {}]  }
   0x1   :  { %15 = vsyncpa [#allocation6], 0 }
   0x2   :  { %16 = vsyncpa [#allocation4], 0 }
   0x3   :  { %18 = vsyncpa [#allocation4 + $0x1], 0  ;;  %s2479_s30 = smov 0   ;;  %s2481_s10 = smov 0  }
   0x4   :  { %s2483_s11 = smov 0   ;;  %s2485_s12 = smov 0  }
   0x5 LB: > { %3237 = sst [smem:[#allocation11_spill]] %s2412_s11  ;;  %s2500_s13 = sadd.s32 4294967295, %s2416_s12   ;;  %s2416_s12 = sphi %s2485_s12, %s3301_s12   ;;  %s2412_s11 = sphi %s2483_s11, %s3303_s11   ;;  %s2408_s10 = sphi %s2481_s10, %s3305_s10   ;;  %s2404_s30 = sphi %s2479_s30, %s3304_s30  }
   0x6   : > { %s1742_s14 = sadd.s32 4294967294, %s2416_s12   ;;  %s2504_s15 = sadd.s32 1, %s2416_s12  }
   0x7   : > { %3238 = sst [smem:[#allocation12_spill]] %s2504_s15  ;;  %s225_s16 = sadd.s32 1, %s2412_s11 }
   0x8   : > { %s222_s17 = ssub.s32 %s2416_s12, %s2504_s15  ;;  %p235_p0 = scmp.ne.s32.totalorder %s2412_s11, %s2408_s10 }
   0x9   : > { %p223_p1 = scmp.eq.s32.totalorder %s222_s17, 0  ;;  %p236_p2 = scmp.eq.s32.totalorder %s2500_s13, 3 }
   0xa   : > { %p241_p3 = scmp.ne.s32.totalorder %s2408_s10, %s2404_s30  ;;  %p242_p4 = scmp.eq.s32.totalorder %s1742_s14, 3 }
   0xb   : > { %s2515_s18 = scalar_select %p223_p1, %s2412_s11, %s225_s16  }
   0xc   : > { %p2517_p5 = por %p236_p2, %p235_p0  ;;  %p2521_p6 = por %p242_p4, %p241_p3 }
   0xd   : > { %3239 = sst [smem:[#allocation13_spill]] %s2515_s18  ;;  %p1743_p7 = scmp.ge.s32.totalorder %s2416_s12, 1 }
   0xe   : > { %s3240_s19 = scalar_select %p2517_p5, 1, 0 }
   0xf   : > { %s3241_s20 = scalar_select %p2521_p6, 1, 0 }
  0x10   : > { %p249_p8 = scmp.lt.s32.totalorder %s2416_s12, 5  ;;  %p3214_p9 = scmp.eq.s32.totalorder %s2500_s13, 0 }
  0x11   : > { %s2418_s22 = smov [#allocation2]   ;;  %s2419_s25 = smov [#allocation5]  }
  0x12   : > { %p2528_p10 = pnand %p1743_p7, %p249_p8  ;;  %s261_s23 = sshll.u32 %s2418_s22, 4  ;;  %s262_s23 = int_to_ptr.vmem [resolvable:$true] %s261_s23 }
  0x13   : > { %s277_s26 = sshll.u32 %s2419_s25, 4  ;;  %s2290_s29 = scalar_lea.hbm %s3205_s1, 1536  ;;  %s2540_s26 = int_to_ptr.vmem [resolvable:$true] %s277_s26 }
  0x14   : > { %s3242_s21 = scalar_select %p2528_p10, 1, 0 }
  0x15   : > { %p2166_p11 = pneg %p2528_p10  ;;  %p2291_p13 = scmp.ne.s32.totalorder %s3205_s1, %s2290_s29 }
  0x16   : > { %p2297_p3 = scmp.lt.u32.totalorder %s2290_s29, %s3205_s1 }
  0x17   : > { %p2536_p12 = pnand %p3214_p9, %p2166_p11 }
  0x19   : > { %p2292_p0 = pneg %p2536_p12 }
  0x1b   : > { %p2293_p1 = pnand %p2292_p0, %p2291_p13 }
  0x1d   : > { %p2294_p2 = pneg %p2293_p1 }
  0x1f   : > { %p2299_p4 = pnand %p2297_p3, %p2294_p2 }
  0x21   : > { %2302 = shalt.err (!%p2299_p4)
}
  0x22   : > { %s2303_s25 = scalar_lea.vmem %s262_s23, 1536  ;;  %p2311_p9 = scmp.lt.s32.totalorder %s262_s23, %s262_s23 }
  0x23   : > { %p2304_p7 = scmp.ne.s32.totalorder %s262_s23, %s2303_s25  ;;  %p2312_p6 = scmp.lt.s32.totalorder %s2303_s25, %s2303_s25 }
  0x25   : > { %p2306_p8 = pnand %p2304_p7, %p2292_p0  ;;  %p2313_p5 = por %p2312_p6, %p2311_p9 }
  0x27   : > { %p2307_p11 = pneg %p2306_p8 }
  0x29   : > { %p2314_p10 = pnand %p2313_p5, %p2307_p11 }
  0x2b   : > { %2317 = shalt.err (!%p2314_p10)
}
  0x2c   : > { %s2420_s27 = smov 384   ;;  %s2421_s28 = smov 24  }
  0x2d   : > { %2169 = dma.hbm_to_vmem [thread:$0]  (!%p2536_p12), %s3205_s1, 1536, %s262_s23, [#allocation3], %s2420_s27, %s2420_s27, %s2421_s28  }
  0x2e   : > { %s2318_s22 = scalar_lea.hbm %s3207_s3, 2048 }
  0x2f   : > { %p2319_p13 = scmp.ne.s32.totalorder %s3207_s3, %s2318_s22  ;;  %p2325_p9 = scmp.lt.u32.totalorder %s2318_s22, %s3207_s3 }
  0x31   : > { %p2321_p5 = pnand %p2319_p13, %p2292_p0 }
  0x33   : > { %p2322_p6 = pneg %p2321_p5 }
  0x35   : > { %p2327_p10 = pnand %p2325_p9, %p2322_p6 }
  0x37   : > { %2330 = shalt.err (!%p2327_p10)
}
  0x38   : > { %s2331_s23 = scalar_lea.vmem %s2540_s26, 2048  ;;  %p2339_p4 = scmp.lt.s32.totalorder %s2540_s26, %s2540_s26 }
  0x39   : > { %p2332_p1 = scmp.ne.s32.totalorder %s2540_s26, %s2331_s23  ;;  %p2340_p7 = scmp.lt.s32.totalorder %s2331_s23, %s2331_s23 }
  0x3b   : > { %p2334_p2 = pnand %p2332_p1, %p2292_p0  ;;  %p2341_p8 = por %p2340_p7, %p2339_p4 }
  0x3d   : > { %p2335_p3 = pneg %p2334_p2 }
  0x3f   : > { %p2342_p11 = pnand %p2341_p8, %p2335_p3 }
  0x41   : > { %2345 = shalt.err (!%p2342_p11)
}
  0x42   : > { %s2422_s11 = smov 128   ;;  %s2423_s15 = smov 8  }
  0x43   : > { %2172 = dma.hbm_to_vmem [thread:$0]  (!%p2536_p12), %s3207_s3, 2048, %s2540_s26, [#allocation6], %s2422_s11, %s2422_s11, %s2423_s15  }
  0x44   : > { %p3244_p13 = scmp.ne.s32.totalorder %s3242_s21, 0 }
  0x46   : > { %318 = sbr.rel (%p3244_p13) target bundleno = 1134 (0x46e), region = 56 }
  0x4d   : > { %p3245_p0 = scmp.eq.s32.totalorder %s2500_s13, 0 }
  0x4f   : > { %2391 = dma.done.wait (%p3245_p0), [#allocation3], 1536   ;;  %p3246_p5 = pmov %p3245_p0 }
  0x50   : > { %p3247_p6 = pmov %p3245_p0 }
  0x51   : > { %2393 = vsyncadd (%p3246_p5), [#allocation3], 4294965760 }
  0x52   : > { %2395 = dma.done.wait (%p3247_p6), [#allocation6], 2048   ;;  %p3248_p9 = pmov %p3245_p0 }
  0x53   : > { %s1751_s24 = sshll.u32 %s2500_s13, 2  ;;  %v2424_v0 = vmov 0.0   ;;  %v2425_v1 = vmov 0   ;;  %v376_v2 = vld [vmem:[#allocation2 + $0x8] sm:$0xff]  ;;  %v379_v3 = vld [vmem:[#allocation2 + $0x20] sm:$0xff]  ;;  %v378_v6 = vld [vmem:[#allocation2 + $0x18] sm:$0xff] }
  0x54   : > { %2397 = vsyncadd (%p3248_p9), [#allocation6], 4294965248  ;;  %493 = vmatprep.mubr.f32.mxu0 %v2424_v0  ;;  %p360_p12 = scmp.lt.s32.totalorder %s1751_s24, 15  ;;  %2224 = vset.pattern.permute.xlu0 %v2425_v1  ;;  %v375_v4 = vld [vmem:[#allocation2] sm:$0xff]  ;;  %v2076_v5 = vpack.c.bf16 %v379_v3, %v376_v2  ;;  %v382_v7 = vld [vmem:[#allocation2 + $0x38] sm:$0xff]  ;;  %vm404_vm0 = vcmask 261120  }
  0x55   : > { %2225 = vset.pattern.permute.xlu1 %v2425_v1  ;;  %v385_v8 = vld [vmem:[#allocation2 + $0x50] sm:$0xff]  ;;  %v2078_v9 = vpack.c.bf16 %v378_v6, %v375_v4  ;;  %v384_v12 = vld [vmem:[#allocation2 + $0x48] sm:$0xff]  ;;  %v383_v18 = vld [vmem:[#allocation2 + $0x40] sm:$0xff]  ;;  %v389_v6 = vlaneseq  ;;  %vm1278_vm3 = vcmask 1043456   ;;  %vm1205_vm4 = vcmask 31744   ;;  %s356_s27 = sand.u32 1, %s2408_s10  }
  0x56   : > { %s3307_s24 = smov (!%p360_p12, %s1751_s24), 15  ;;  %v2080_v10 = vpack.c.bf16 %v385_v8, %v382_v7  ;;  %v381_v11 = vld [vmem:[#allocation2 + $0x30] sm:$0xff]  ;;  %2077 = vmatprep.subr.bf16.mxu0 %v2076_v5  ;;  %v380_v15 = vld [vmem:[#allocation2 + $0x28] sm:$0xff]  ;;  %v386_v19 = vld [vmem:[#allocation2 + $0x58] sm:$0xff]  ;;  %s1804_s14 = sshll.u32 %s2500_s13, 10 }
  0x57   : > { %s1802_s21 = sshll.u32 %s3307_s24, 4  ;;  %v377_v14 = vld [vmem:[#allocation2 + $0x10] sm:$0xff]  ;;  %2079 = vmatpush1.bf16.msra.mxu0 %v2078_v9  ;;  %v2082_v16 = vpack.c.bf16 %v384_v12, %v381_v11  ;;  %v2088_v20 = vpack.c.bf16 %v386_v19, %v383_v18  ;;  %v647_v21 = vld [vmem:[%s3211_s7] sm:$0xff]  ;;  %v648_v23 = vld [vmem:[%s3211_s7 + $0x8] sm:$0xff]  ;;  %v2741_v9 = vshrl.u32 %v389_v6, 7  ;;  %s3159_s22 = scalar_lea.hbm %s3213_s9, %s1804_s14 }
  0x58   : > { %s2604_s29 = scalar_lea.vmem %s3204_s0, %s1802_s21  ;;  %v2084_v17 = vpack.c.bf16 %v380_v15, %v377_v14  ;;  %2081 = vmatprep.subr.bf16.mxu0 %v2080_v10  ;;  %684 = vperm.xlu0 %2224, %v647_v21   ;;  %v649_v22 = vld [vmem:[%s3211_s7 + $0x10] sm:$0xff]  ;;  %v650_v24 = vld [vmem:[%s3211_s7 + $0x18] sm:$0xff]  ;;  %v651_v26 = vld [vmem:[%s3211_s7 + $0x20] sm:$0xff]  ;;  %s3163_s25 = scalar_lea.sflag [#allocation4], %s356_s27 }
  0x59   : > { %v367_v13 = vld [vmem:[%s2604_s29] sm:$0xff]  ;;  %694 = vperm.xlu1 %2225, %v649_v22   ;;  %v368_v25 = vld [vmem:[%s2604_s29 + $0x8] sm:$0xff]  ;;  %v369_v27 = vld [vmem:[%s2604_s29 + $0x10] sm:$0xff]  ;;  %v391_v10 = vsub.s32 0, %v2741_v9  ;;  %v399_v15 = vsub.s32 2, %v2741_v9  ;;  %vm673_vm1 = vcmp.lt.s32.totalorder %v2741_v9, 1 }
  0x5a   : > { %1914 = vmatprep.mubr.msk.f32.mxu1 %vm404_vm0, %v367_v13  ;;  %2085 = vmatprep.subr.bf16.mxu1 %v2084_v17  ;;  %v652_v28 = vld [vmem:[%s3211_s7 + $0x28] sm:$0xff]  ;;  %v370_v29 = vld [vmem:[%s2604_s29 + $0x18] sm:$0xff]  ;;  %v653_v30 = vld [vmem:[%s3211_s7 + $0x30] sm:$0xff]  ;;  %vm738_vm2 = vcmp.lt.s32.totalorder %v2741_v9, 7  ;;  %p3299_p1 = scmp.ne.s32.totalorder %s3240_s19, 0  ;;  %s2426_s23 = smov [#allocation7]  }
  0x5b   : > { %2087 = vmatpush3.bf16.msra.mxu1 %v2084_v17  ;;  %2083 = vmatpush1.bf16.msra.mxu0 %v2082_v16  ;;  %v371_v31 = vld [vmem:[%s2604_s29 + $0x20] sm:$0xff]  ;;  %v654_v32 = vld [vmem:[%s3211_s7 + $0x38] sm:$0xff]  ;;  %v372_v33 = vld [vmem:[%s2604_s29 + $0x28] sm:$0xff]  ;;  %s2350_s11 = sshll.u32 %s2426_s23, 4  ;;  %s2351_s11 = int_to_ptr.vmem [resolvable:$false] %s2350_s11 }
  0x5c   : > { %2089 = vmatprep.subr.bf16.mxu1 %v2088_v20  ;;  %689 = vperm.xlu0 %2224, %v648_v23   ;;  %v373_v34 = vld [vmem:[%s2604_s29 + $0x30] sm:$0xff]  ;;  %v655_v35 = vld [vmem:[%s3212_s8] sm:$0xff]  ;;  %v656_v36 = vld [vmem:[%s3212_s8 + $0x8] sm:$0xff]  ;;  %s2352_s15 = scalar_lea.vmem %s2351_s11, 2048 }
  0x5d   : > { %699 = vperm.xlu1 %2225, %v650_v24   ;;  %v374_v37 = vld [vmem:[%s2604_s29 + $0x38] sm:$0xff]  ;;  %v657_v38 = vld [vmem:[%s3212_s8 + $0x10] sm:$0xff]  ;;  %v659_v40 = vld [vmem:[%s3212_s8 + $0x20] sm:$0xff]  ;;  %s1750_s29 = sshll.u32 %s356_s27, 6 }
  0x5e   : > { %1754 = vmatmul.mubr.msk.f32.vlgmr.msra.gmra.mrb[0].mxu0 %vm404_vm0, %v367_v13  ;;  %v658_v39 = vld [vmem:[%s3212_s8 + $0x18] sm:$0xff]  ;;  %v660_v41 = vld [vmem:[%s3212_s8 + $0x28] sm:$0xff]  ;;  %v661_v42 = vld [vmem:[%s3212_s8 + $0x30] sm:$0xff]  ;;  %v395_v13 = vsub.s32 1, %v2741_v9  ;;  %s358_s26 = scalar_lea.vmem [#allocation7], %s1750_s29 }
  0x5f   : > { %2091 = vmatpush3.bf16.msra.mxu1 %v2088_v20  ;;  %499 = vmatprep.mubr.f32.mxu0 %v2424_v0  ;;  %v662_v43 = vld [vmem:[%s3212_s8 + $0x38] sm:$0xff]  ;;  %v867_v44 = vld [vmem:[%s3209_s5] sm:$0xff]  ;;  %v868_v45 = vld [vmem:[%s3209_s5 + $0x8] sm:$0xff]  ;;  %s1658_s28 = sshll.u32 %s358_s26, 4  ;;  %s3154_s28 = int_to_ptr.vmem [resolvable:$true] %s1658_s28 }
  0x60   : > { %704 = vperm.xlu0 %2224, %v651_v26   ;;  %v2092_v46 = vpack.c.bf16 %v868_v45, %v867_v44  ;;  %v869_v47 = vld [vmem:[%s3209_s5 + $0x10] sm:$0xff]  ;;  %v870_v48 = vld [vmem:[%s3209_s5 + $0x18] sm:$0xff]  ;;  %v871_v50 = vld [vmem:[%s3209_s5 + $0x20] sm:$0xff]  ;;  %s2346_s13 = scalar_lea.vmem %s3154_s28, 1024  ;;  %p2353_p4 = scmp.lt.s32.totalorder %s3154_s28, %s2351_s11 }
  0x61   : > { %709 = vperm.xlu1 %2225, %v652_v28   ;;  %v2096_v49 = vpack.c.bf16 %v870_v48, %v869_v47  ;;  %v872_v51 = vld [vmem:[%s3209_s5 + $0x28] sm:$0xff]  ;;  %v873_v53 = vld [vmem:[%s3209_s5 + $0x30] sm:$0xff]  ;;  %v874_v54 = vld [vmem:[%s3209_s5 + $0x38] sm:$0xff]  ;;  %p2347_p10 = scmp.ne.s32.totalorder %s3154_s28, %s2346_s13  ;;  %p2354_p7 = scmp.lt.s32.totalorder %s2352_s15, %s2346_s13 }
  0x62   : > { %1915 = vmatmul.mubr.msk.f32.vlgmr.msra.gmra.mrb[0].mxu1 %vm404_vm0, %v368_v25  ;;  %1755 = vmatmul.mubr.msk.f32.gmra.mrb[2].mxu0 %vm404_vm0, %v368_v25  ;;  %v2100_v52 = vpack.c.bf16 %v872_v51, %v871_v50  ;;  %v2104_v55 = vpack.c.bf16 %v874_v54, %v873_v53  ;;  %v875_v56 = vld [vmem:[%s3209_s5 + $0x40] sm:$0xff]  ;;  %v876_v57 = vld [vmem:[%s3209_s5 + $0x48] sm:$0xff]  ;;  %v877_v59 = vld [vmem:[%s3209_s5 + $0x50] sm:$0xff] }
  0x63   : > { %1917 = vmatprep.mubr.msk.f32.mxu1 %vm404_vm0, %v369_v27  ;;  %505 = vmatprep.mubr.f32.mxu0 %v2424_v0  ;;  %v2108_v58 = vpack.c.bf16 %v876_v57, %v875_v56  ;;  %v878_v60 = vld [vmem:[%s3209_s5 + $0x58] sm:$0xff]  ;;  %v879_v62 = vld [vmem:[%s3209_s5 + $0x60] sm:$0xff]  ;;  %v880_v63 = vld [vmem:[%s3209_s5 + $0x68] sm:$0xff]  ;;  %p2348_p2 = pnand %p2347_p10, %p3299_p1  ;;  %p2355_p8 = por %p2354_p7, %p2353_p4 }
  0x64   : > { %714 = vperm.xlu0 %2224, %v653_v30   ;;  %2093 = vmatprep.subr.bf16.mxu0 %v2092_v46  ;;  %v2112_v61 = vpack.c.bf16 %v878_v60, %v877_v59  ;;  %v881_v1 = vld [vmem:[%s3209_s5 + $0x70] sm:$0xff]  ;;  %v882_v2 = vld [vmem:[%s3209_s5 + $0x78] sm:$0xff]  ;;  %v387_v12 = vld [vmem:[%s3206_s2] sm:$0x7] }
  0x65   : > { %719 = vperm.xlu1 %2225, %v654_v32   ;;  %2095 = vmatpush3.bf16.msra.mxu0 %v2092_v46  ;;  %v2120_v3 = vpack.c.bf16 %v882_v2, %v881_v1  ;;  %v2753_v16 = vrot.slane %v387_v12, %v391_v10  ;;  %v2755_v17 = vrot.slane %v387_v12, %v395_v13  ;;  %v1204_v9 = vld [vmem:[%s3210_s6] sm:$0xf]  ;;  %p2349_p3 = pneg %p2348_p2 }
  0x66   : > { %1918 = vmatmul.mubr.msk.f32.gmra.mrb[2].mxu1 %vm404_vm0, %v370_v29  ;;  %1756 = vmatmul.mubr.msk.f32.gmra.mrb[4].mxu0 %vm404_vm0, %v369_v27  ;;  %v2761_v21 = vrot.slane %v387_v12, %v399_v15 }
  0x67   : > { %1920 = vmatprep.mubr.msk.f32.mxu1 %vm404_vm0, %v371_v31  ;;  %511 = vmatprep.mubr.f32.mxu0 %v2424_v0  ;;  %p2356_p11 = pnand %p2355_p8, %p2349_p3 }
  0x68   : > { %749 = vperm.xlu0 %2224, %v655_v35   ;;  %2097 = vmatprep.subr.bf16.mxu0 %v2096_v49 }
  0x69   : > { %754 = vperm.xlu1 %2225, %v656_v36   ;;  %2099 = vmatpush3.bf16.msra.mxu0 %v2096_v49 }
  0x6a   : > { %1921 = vmatmul.mubr.msk.f32.gmra.mrb[4].mxu1 %vm404_vm0, %v372_v33  ;;  %1757 = vmatmul.mubr.msk.f32.gmra.mrb[6].mxu0 %vm404_vm0, %v370_v29 }
  0x6b   : > { %1923 = vmatprep.mubr.msk.f32.mxu1 %vm404_vm0, %v373_v34  ;;  %517 = vmatprep.mubr.f32.mxu0 %v2424_v0 }
  0x6c   : > { %759 = vperm.xlu0 %2224, %v657_v38   ;;  %2101 = vmatprep.subr.bf16.mxu0 %v2100_v52 }
  0x6d   : > { %764 = vperm.xlu1 %2225, %v658_v39   ;;  %2103 = vmatpush3.bf16.msra.mxu0 %v2100_v52 }
  0x6e   : > { %1924 = vmatmul.mubr.msk.f32.gmra.mrb[6].mxu1 %vm404_vm0, %v374_v37  ;;  %1758 = vmatmul.mubr.msk.f32.gmra.mrb[8].mxu0 %vm404_vm0, %v371_v31 }
  0x6f   : > { %523 = vmatprep.mubr.f32.mxu0 %v2424_v0  ;;  %2105 = vmatprep.subr.bf16.mxu0 %v2104_v55 }
  0x70   : > { %769 = vperm.xlu0 %2224, %v659_v40   ;;  %1994 = vmatprep.subr.msk.mxu1 %vm1278_vm3, %v1204_v9 }
  0x71   : > { %774 = vperm.xlu1 %2225, %v660_v41   ;;  %2107 = vmatpush3.bf16.msra.mxu0 %v2104_v55 }
  0x72   : > { %1759 = vmatmul.mubr.msk.f32.gmra.mrb[10].mxu0 %vm404_vm0, %v372_v33  ;;  %2109 = vmatprep.subr.bf16.mxu0 %v2108_v58 }
  0x73   : > { %529 = vmatprep.mubr.f32.mxu0 %v2424_v0  ;;  %1995 = vmatpush3.msk.msra.mxu1 %vm1278_vm3, %v1204_v9 }
  0x74   : > { %779 = vperm.xlu0 %2224, %v661_v42  }
  0x75   : > { %784 = vperm.xlu1 %2225, %v662_v43   ;;  %2111 = vmatpush3.bf16.msra.mxu0 %v2108_v58 }
  0x76   : > { %1760 = vmatmul.mubr.msk.f32.gmra.mrb[12].mxu0 %vm404_vm0, %v373_v34  ;;  %2113 = vmatprep.subr.bf16.mxu0 %v2112_v61 }
  0x77   : > { %535 = vmatprep.mubr.f32.mxu0 %v2424_v0  ;;  %v2116_v0 = vpack.c.bf16 %v880_v63, %v879_v62 }
  0x79   : > { %2115 = vmatpush3.bf16.msra.mxu0 %v2112_v61 }
  0x7a   : > { %1761 = vmatmul.mubr.msk.f32.gmra.mrb[14].mxu0 %vm404_vm0, %v374_v37  ;;  %2117 = vmatprep.subr.bf16.mxu0 %v2116_v0 }
  0x7d   : > { %2119 = vmatpush3.bf16.msra.mxu0 %v2116_v0 }
  0x7e   : > { %2121 = vmatprep.subr.bf16.mxu0 %v2120_v3 }
  0x81   : > { %2123 = vmatpush3.bf16.msra.mxu0 %v2120_v3 }
  0xd7   : > { %v2733_v4 = vpop.permute.xlu0 %684 }
  0xd8   : > { %v2735_v5 = vpop.permute.xlu1 %694 }
  0xdb   : > { %v2737_v7 = vpop.permute.xlu0 %689 }
  0xdc   : > { %v2739_v8 = vpop.permute.xlu1 %699 }
  0xdf   : > { %v2744_v11 = vpop.permute.xlu0 %704 }
  0xe0   : > { %v2750_v14 = vpop.permute.xlu1 %709 }
  0xe3   : > { %v2757_v18 = vpop.permute.xlu0 %714 }
  0xe4   : > { %v2759_v20 = vpop.permute.xlu1 %719 }
  0xe7   : > { %v2777_v32 = vpop.permute.xlu0 %749 }
  0xe8   : > { %3249 = vst [vmem:[#allocation14_spill] sm:$0xff] %v2777_v32  ;;  %v2784_v35 = vpop.permute.xlu1 %754 }
  0xe9   : > { %3250 = vst [vmem:[#allocation15_spill] sm:$0xff] %v2784_v35 }
  0xeb   : > { %v2795_v49 = vpop.permute.xlu0 %759 }
  0xec   : > { %3251 = vst [vmem:[#allocation16_spill] sm:$0xff] %v2795_v49  ;;  %v2824_v55 = vpop.permute.xlu1 %764 }
  0xed   : > { %3253 = vst [vmem:[#allocation18_spill] sm:$0xff] %v2824_v55 }
  0xef   : > { %v2842_v6 = vpop.permute.xlu0 %769 }
  0xf0   : > { %3256 = vst [vmem:[#allocation21_spill] sm:$0xff] %v2842_v6 }
 0x131   : > { %v495_v19 = vpop.f32.mrb[0].mxu0 }
 0x132   : > { %v2764_v22 = vadd.f32 %v495_v19, %v2753_v16  ;;  %v497_v23 = vpop.f32.mrb[1].mxu0 }
 0x133   : > { %v2767_v24 = vadd.f32 %v497_v23, %v2755_v17  ;;  %v2851_v23 = vpop.permute.xlu1 %774 }
 0x134   : > { %3257 = vst [vmem:[#allocation22_spill] sm:$0xff] %v2851_v23 }
 0x135   : > { %v1916_v25 = vpop.f32.mrb[0].mxu1  ;;  %v501_v26 = vpop.f32.mrb[2].mxu0  ;;  %v2774_v29 = vmul.f32 %v2767_v24, %v2764_v22  ;;  %v3222_v38 = vrot.slane %v2767_v24, 7  ;;  %v3223_v42 = vrot.slane %v2767_v24, 1 }
 0x136   : > { %v2770_v27 = vadd.f32 %v1916_v25, %v2761_v21  ;;  %v608_v28 = vpop.f32.mrb[1].mxu1  ;;  %v502_v30 = vadd.f32 %v501_v26, %v2753_v16  ;;  %v503_v31 = vpop.f32.mrb[3].mxu0 }
 0x137   : > { %v2780_v33 = vadd.f32 %v608_v28, %v2761_v21  ;;  %v504_v34 = vadd.f32 %v503_v31, %v2755_v17 }
 0x138   : > { %v3224_v36 = vrot.slane %v2770_v27, 7  ;;  %v3221_v37 = vrot.slane %v2770_v27, 1 }
 0x139   : > { %v3225_v39 = vrot.slane %v2780_v33, 7  ;;  %v819_v40 = vrot.slane %v2780_v33, 1  ;;  %v1919_v41 = vpop.f32.mrb[2].mxu1  ;;  %v664_v43 = vrot.slane %v504_v34, 7  ;;  %v731_v44 = vrot.slane %v504_v34, 1  ;;  %v507_v45 = vpop.f32.mrb[4].mxu0 }
 0x13a   : > { %v618_v46 = vpop.f32.mrb[3].mxu1  ;;  %v2793_v47 = vmul.f32 %v504_v34, %v502_v30  ;;  %v509_v48 = vpop.f32.mrb[5].mxu0  ;;  %v2831_v62 = vadd.f32 %v1919_v41, %v2761_v21  ;;  %v508_v12 = vadd.f32 %v507_v45, %v2753_v16 }
 0x13b   : > { %v2803_v50 = vsel %vm673_vm1, %v3225_v39, %v3224_v36  ;;  %v2811_v51 = vsel %vm738_vm2, %v819_v40, %v3221_v37  ;;  %v680_v52 = vsel %vm673_vm1, %v3222_v38, %v664_v43  ;;  %v2818_v53 = vadd.f32 %v509_v48, %v2755_v17  ;;  %v2885_v37 = vpop.permute.xlu0 %779 }
 0x13c   : > { %3252 = vst [vmem:[#allocation17_spill] sm:$0xff] %v2811_v51  ;;  %v745_v54 = vsel %vm738_vm2, %v3223_v42, %v731_v44  ;;  %v723_v56 = vmul.f32 %v2737_v7, %v680_v52  ;;  %v2855_v26 = vadd.f32 %v618_v46, %v2761_v21 }
 0x13d   : > { %v787_v57 = vmul.f32 %v2777_v32, %v745_v54  ;;  %v1922_v58 = vpop.f32.mrb[4].mxu1  ;;  %v665_v59 = vrot.slane %v2818_v53, 7  ;;  %v732_v60 = vrot.slane %v2818_v53, 1  ;;  %v513_v61 = vpop.f32.mrb[6].mxu0 }
 0x13e   : > { %v2834_v63 = vadd.f32 %v1922_v58, %v2761_v21  ;;  %v628_v0 = vpop.f32.mrb[5].mxu1  ;;  %v515_v2 = vpop.f32.mrb[7].mxu0  ;;  %v2844_v10 = vmul.f32 %v723_v56, %v502_v30  ;;  %3258 = vst [vmem:[#allocation23_spill] sm:$0xff] %v2855_v26 }
 0x13f   : > { %v2837_v1 = vmul.f32 %v787_v57, %v2764_v22  ;;  %v2840_v3 = vadd.f32 %v628_v0, %v2761_v21  ;;  %v516_v13 = vadd.f32 %v515_v2, %v2755_v17  ;;  %v744_v15 = vsel %vm738_vm2, %v731_v44, %v732_v60 }
 0x140   : > { %3254 = vst [vmem:[#allocation19_spill] sm:$0xff] %v2834_v63  ;;  %v824_v19 = vrot.slane %v2834_v63, 1  ;;  %v788_v25 = vmul.f32 %v2784_v35, %v744_v15  ;;  %v679_v34 = vsel %vm673_vm1, %v664_v43, %v665_v59  ;;  %v514_v0 = vadd.f32 %v513_v61, %v2753_v16  ;;  %v2887_v61 = vpop.permute.xlu1 %784 }
 0x141   : > { %3255 = vst [vmem:[#allocation20_spill] sm:$0xff] %v2840_v3  ;;  %v3220_v28 = vrot.slane %v2840_v3, 1  ;;  %v1925_v31 = vpop.f32.mrb[6].mxu1  ;;  %v733_v41 = vrot.slane %v516_v13, 1  ;;  %v519_v45 = vpop.f32.mrb[8].mxu0  ;;  %v724_v54 = vmul.f32 %v2735_v5, %v679_v34 }
 0x142   : > { %v2862_v44 = vadd.f32 %v1925_v31, %v2761_v21  ;;  %v638_v52 = vpop.f32.mrb[7].mxu1  ;;  %v2865_v56 = vmul.f32 %v788_v25, %v502_v30  ;;  %v521_v46 = vpop.f32.mrb[9].mxu0  ;;  %v666_v25 = vrot.slane %v516_v13, 7  ;;  %v520_v31 = vadd.f32 %v519_v45, %v2753_v16 }
 0x143   : > { %v2872_v43 = vsel %vm738_vm2, %v3220_v28, %v824_v19  ;;  %v2875_v58 = vadd.f32 %v638_v52, %v2761_v21  ;;  %v522_v2 = vadd.f32 %v521_v46, %v2755_v17  ;;  %v743_v30 = vsel %vm738_vm2, %v732_v60, %v733_v41 }
 0x144   : > { %3259 = vst [vmem:[#allocation24_spill] sm:$0xff] %v2862_v44  ;;  %3260 = vst [vmem:[#allocation25_spill] sm:$0xff] %v2872_v43  ;;  %v826_v15 = vrot.slane %v2862_v44, 1  ;;  %v789_v34 = vmul.f32 %v2795_v49, %v743_v30  ;;  %v2893_v46 = vmul.f32 %v724_v54, %v508_v12 }
 0x145   : > { %3261 = vst [vmem:[#allocation26_spill] sm:$0xff] %v2875_v58  ;;  %v825_v28 = vrot.slane %v2875_v58, 1  ;;  %v667_v21 = vrot.slane %v522_v2, 7  ;;  %v734_v52 = vrot.slane %v522_v2, 1  ;;  %v525_v38 = vpop.f32.mrb[10].mxu0 }
 0x146   : > { %v834_v60 = vsel %vm738_vm2, %v826_v15, %v819_v40  ;;  %v2895_v42 = vmul.f32 %v789_v34, %v508_v12  ;;  %v527_v45 = vpop.f32.mrb[11].mxu0  ;;  %v526_v48 = vadd.f32 %v525_v38, %v2753_v16 }
 0x147   : > { %v2900_v36 = vsel %vm738_vm2, %v824_v19, %v825_v28  ;;  %v827_v57 = vsel %vm738_vm2, %v825_v28, %v826_v15  ;;  %v528_v39 = vadd.f32 %v527_v45, %v2755_v17  ;;  %v742_v40 = vsel %vm738_vm2, %v733_v41, %v734_v52 }
 0x148   : > { %3262 = vst [vmem:[#allocation27_spill] sm:$0xff] %v2900_v36  ;;  %v2909_v54 = vmul.f32 %v827_v57, %v2885_v37  ;;  %v790_v34 = vmul.f32 %v2824_v55, %v742_v40  ;;  %v2913_v30 = vmul.f32 %v834_v60, %v2887_v61  ;;  %v678_v19 = vsel %vm673_vm1, %v665_v59, %v666_v25 }
 0x149   : > { %v677_v28 = vsel %vm673_vm1, %v666_v25, %v667_v21  ;;  %v668_v38 = vrot.slane %v528_v39, 7  ;;  %v735_v15 = vrot.slane %v528_v39, 1  ;;  %v531_v45 = vpop.f32.mrb[12].mxu0  ;;  %v725_v43 = vmul.f32 %v2739_v8, %v678_v19 }
 0x14a   : > { %3263 = vst [vmem:[#allocation28_spill] sm:$0xff] %v2909_v54  ;;  %3264 = vst [vmem:[#allocation29_spill] sm:$0xff] %v2913_v30  ;;  %v726_v41 = vmul.f32 %v2744_v11, %v677_v28  ;;  %v2921_v57 = vmul.f32 %v790_v34, %v514_v0  ;;  %v532_v40 = vadd.f32 %v531_v45, %v2753_v16  ;;  %v533_v54 = vpop.f32.mrb[13].mxu0 }
 0x14b   : > { %v2925_v60 = vmul.f32 %v2818_v53, %v508_v12  ;;  %v2927_v30 = vmul.f32 %v516_v13, %v514_v0  ;;  %v534_v59 = vadd.f32 %v533_v54, %v2755_v17  ;;  %v741_v25 = vsel %vm738_vm2, %v734_v52, %v735_v15 }
 0x14c   : > { %v846_v36 = vmul.f32 %v725_v43, %v514_v0  ;;  %v847_v49 = vmul.f32 %v726_v41, %v520_v31  ;;  %v791_v19 = vmul.f32 %v2842_v6, %v741_v25  ;;  %v676_v34 = vsel %vm673_vm1, %v667_v21, %v668_v38 }
 0x14d   : > { %v855_v28 = vmul.f32 %v522_v2, %v520_v31  ;;  %v856_v45 = vmul.f32 %v528_v39, %v526_v48  ;;  %v669_v55 = vrot.slane %v534_v59, 7  ;;  %v736_v51 = vrot.slane %v534_v59, 1  ;;  %v537_v53 = vpop.f32.mrb[14].mxu0 }
 0x14e   : > { %v727_v12 = vmul.f32 %v2750_v14, %v676_v34  ;;  %v857_v13 = vmul.f32 %v534_v59, %v532_v40  ;;  %v800_v54 = vrot.slane %v2834_v63, 7  ;;  %v863_v32 = vmul.f32 %v791_v19, %v520_v31  ;;  %v539_v43 = vpop.f32.mrb[15].mxu0 }
 0x14f   : > { %v538_v52 = vadd.f32 %v537_v53, %v2753_v16  ;;  %v3265_v0 = vrot.slane %v2780_v33, 7  ;;  %v3266_v41 = vrot.slane %v2862_v44, 7  ;;  %v540_v39 = vadd.f32 %v539_v43, %v2755_v17 }
 0x150   : > { %v740_v21 = vsel %vm738_vm2, %v735_v15, %v736_v51  ;;  %v848_v59 = vmul.f32 %v727_v12, %v526_v48  ;;  %v675_v31 = vsel %vm673_vm1, %v668_v38, %v669_v55  ;;  %v799_v16 = vrot.slane %v2840_v3, 7 }
 0x151   : > { %v2944_v2 = vsel %vm673_vm1, %v3266_v41, %v3265_v0  ;;  %v792_v25 = vmul.f32 %v2851_v23, %v740_v21  ;;  %v728_v19 = vmul.f32 %v2757_v18, %v675_v31  ;;  %v3267_v34 = vrot.slane %v2831_v62, 7 }
 0x152   : > { %v3268_v53 = vrot.slane %v2855_v26, 7  ;;  %v801_v15 = vrot.slane %v2875_v58, 7  ;;  %v670_v12 = vrot.slane %v540_v39, 7  ;;  %v737_v43 = vrot.slane %v540_v39, 1 }
 0x153   : > { %v858_v0 = vmul.f32 %v540_v39, %v538_v52  ;;  %v864_v38 = vmul.f32 %v792_v25, %v526_v48  ;;  %v849_v41 = vmul.f32 %v728_v19, %v532_v40  ;;  %v3270_v21 = vrot.slane %v2770_v27, 7 }
 0x154   : > { %v2960_v17 = vsel %vm673_vm1, %v3268_v53, %v3267_v34  ;;  %v3269_v6 = vmov %v3268_v53  ;;  %v2973_v23 = vsel %vm673_vm1, %v799_v16, %v800_v54  ;;  %v739_v34 = vsel %vm738_vm2, %v736_v51, %v737_v43 }
 0x155   : > { %v2969_v31 = vsel %vm673_vm1, %v3270_v21, %v3269_v6  ;;  %v3271_v53 = vrot.slane %v2767_v24, 1  ;;  %v3272_v39 = vrot.slane %v2767_v24, 7  ;;  %v674_v6 = vsel %vm673_vm1, %v669_v55, %v670_v12 }
 0x156   : > { %v793_v19 = vmul.f32 %v2885_v37, %v739_v34  ;;  %v729_v51 = vmul.f32 %v2759_v20, %v674_v6  ;;  %v822_v58 = vrot.slane %v2831_v62, 1  ;;  %v3273_v24 = vrot.slane %v2831_v62, 7 }
 0x157   : > { %v746_v48 = vsel %vm738_vm2, %v737_v43, %v3271_v53  ;;  %v681_v25 = vsel %vm673_vm1, %v670_v12, %v3272_v39  ;;  %v821_v43 = vrot.slane %v2855_v26, 1  ;;  %v3274_v55 = vrot.slane %v2862_v44, 7 }
 0x158   : > { %v794_v21 = vmul.f32 %v2887_v61, %v746_v48  ;;  %v722_v35 = vmul.f32 %v2733_v4, %v681_v25  ;;  %v2997_v53 = vsel %vm673_vm1, %v3273_v24, %v799_v16  ;;  %v865_v61 = vmul.f32 %v793_v19, %v532_v40 }
 0x159   : > { %v3003_v37 = vsel %vm673_vm1, %v801_v15, %v3274_v55  ;;  %v850_v48 = vmul.f32 %v729_v51, %v538_v52  ;;  %v3008_v39 = vsel %vm673_vm1, %v800_v54, %v801_v15  ;;  %v3275_v25 = vrot.slane %v2770_v27, 1 }
 0x15a   : > { %v866_v12 = vmul.f32 %v794_v21, %v538_v52  ;;  %v843_v34 = vmul.f32 %v722_v35, %v2764_v22  ;;  %v3277_v6 = vrot.slane %v2840_v3, 1  ;;  %v3025_v22 = vsel %vm738_vm2, %v821_v43, %v822_v58  ;;  %v1508_v35 = vld [vmem:[#allocation5 + $0x8] sm:$0xff] }
 0x15b   : > { %v3014_v16 = vsel %vm738_vm2, %v3275_v25, %v821_v43  ;;  %3279 = vst [vmem:[#allocation32_spill] sm:$0xff] %v3025_v22 }
 0x15c   : > { %3276 = vst [vmem:[#allocation30_spill] sm:$0xff] %v3014_v16  ;;  %1958 = vmatprep.mubr.f32.mxu0 %v843_v34  ;;  %v3020_v40 = vsel %vm738_vm2, %v822_v58, %v3277_v6 }
 0x15d   : > { %3278 = vst [vmem:[#allocation31_spill] sm:$0xff] %v3020_v40  ;;  %1959 = vmatmul.mubr.f32.vlgmr.msra.gmra.mrb[16].mxu0 %v2844_v10 }
 0x15e   : > { %1961 = vmatprep.mubr.f32.mxu0 %v2893_v46 }
 0x161   : > { %1962 = vmatmul.mubr.f32.gmra.mrb[18].mxu0 %v846_v36 }
 0x162   : > { %1964 = vmatprep.mubr.f32.mxu0 %v847_v49 }
 0x165   : > { %1965 = vmatmul.mubr.f32.gmra.mrb[20].mxu0 %v848_v59 }
 0x166   : > { %1967 = vmatprep.mubr.f32.mxu0 %v849_v41 }
 0x169   : > { %1968 = vmatmul.mubr.f32.gmra.mrb[22].mxu0 %v850_v48 }
 0x16a   : > { %1970 = vmatprep.mubr.f32.mxu0 %v2774_v29  ;;  %v1507_v29 = vld [vmem:[#allocation5] sm:$0xff] }
 0x16b   : > { %v3039_v36 = vpack.c.bf16 %v1508_v35, %v1507_v29 }
 0x16d   : > { %1971 = vmatmul.mubr.f32.gmra.mrb[24].mxu0 %v2793_v47  ;;  %2125 = vmatprep.subr.bf16.mxu1 %v3039_v36 }
 0x16e   : > { %1973 = vmatprep.mubr.f32.mxu0 %v2925_v60 }
 0x171   : > { %1974 = vmatmul.mubr.f32.gmra.mrb[26].mxu0 %v2927_v30 }
 0x172   : > { %1976 = vmatprep.mubr.f32.mxu0 %v855_v28 }
 0x175   : > { %1977 = vmatmul.mubr.f32.gmra.mrb[28].mxu0 %v856_v45 }
 0x176   : > { %1979 = vmatprep.mubr.f32.mxu0 %v857_v13 }
 0x179   : > { %1980 = vmatmul.mubr.f32.gmra.mrb[30].mxu0 %v858_v0 }
 0x17a   : > { %1982 = vmatprep.mubr.f32.mxu0 %v2837_v1 }
 0x17d   : > { %1983 = vmatmul.mubr.f32.gmra.mrb[32].mxu0 %v2865_v56 }
 0x17e   : > { %1985 = vmatprep.mubr.f32.mxu0 %v2895_v42 }
 0x181   : > { %1986 = vmatmul.mubr.f32.gmra.mrb[34].mxu0 %v2921_v57 }
 0x182   : > { %1988 = vmatprep.mubr.f32.mxu0 %v863_v32 }
 0x185   : > { %1989 = vmatmul.mubr.f32.gmra.mrb[36].mxu0 %v864_v38 }
 0x186   : > { %1991 = vmatprep.mubr.f32.mxu0 %v865_v61 }
 0x189   : > { %1992 = vmatmul.mubr.f32.gmra.mrb[38].mxu0 %v866_v12 }
 0x230   : > { %v1960_v47 = vpop.f32.mrb[16].mxu0 }
 0x231   : > { %v949_v49 = vpop.f32.mrb[17].mxu0 }
 0x234   : > { %v1963_v42 = vpop.f32.mrb[18].mxu0 }
 0x235   : > { %v959_v32 = vpop.f32.mrb[19].mxu0 }
 0x238   : > { %v3042_v1 = vpop.f32.mrb[20].mxu0 }
 0x239   : > { %v3044_v10 = vpop.f32.mrb[21].mxu0 }
 0x23c   : > { %v3046_v56 = vpop.f32.mrb[22].mxu0 }
 0x23d   : > { %v3048_v58 = vpop.f32.mrb[23].mxu0 }
 0x240   : > { %v1972_v46 = vpop.f32.mrb[24].mxu0 }
 0x241   : > { %v1069_v30 = vmax.f32 %v1960_v47, %v1972_v46  ;;  %v989_v57 = vpop.f32.mrb[25].mxu0 }
 0x242   : > { %v1068_v60 = vmax.f32 %v949_v49, %v989_v57 }
 0x244   : > { %v1975_v28 = vpop.f32.mrb[26].mxu0 }
 0x245   : > { %v1071_v45 = vmax.f32 %v1963_v42, %v1975_v28  ;;  %v999_v13 = vpop.f32.mrb[27].mxu0 }
 0x246   : > { %v1070_v54 = vmax.f32 %v959_v32, %v999_v13 }
 0x248   : > { %v3050_v52 = vpop.f32.mrb[28].mxu0 }
 0x249   : > { %v1073_v59 = vmax.f32 %v3042_v1, %v3050_v52  ;;  %v3054_v15 = vpop.f32.mrb[29].mxu0 }
 0x24a   : > { %v1072_v0 = vmax.f32 %v3044_v10, %v3054_v15 }
 0x24c   : > { %v3058_v38 = vpop.f32.mrb[30].mxu0 }
 0x24d   : > { %v1075_v41 = vmax.f32 %v3046_v56, %v3058_v38  ;;  %v3062_v19 = vpop.f32.mrb[31].mxu0 }
 0x24e   : > { %v1074_v21 = vmax.f32 %v3048_v58, %v3062_v19 }
 0x250   : > { %v1984_v51 = vpop.f32.mrb[32].mxu0 }
 0x251   : > { %v1077_v43 = vmax.f32 %v1069_v30, %v1984_v51  ;;  %v1029_v24 = vpop.f32.mrb[33].mxu0 }
 0x252   : > { %v1076_v55 = vmax.f32 %v1068_v60, %v1029_v24 }
 0x253   : > { %v1085_v61 = vsub.f32 %v1960_v47, %v1077_v43  ;;  %v1109_v12 = vsub.f32 %v1972_v46, %v1077_v43  ;;  %v1133_v34 = vsub.f32 %v1984_v51, %v1077_v43 }
 0x254   : > { %v1084_v48 = vsub.f32 %v949_v49, %v1076_v55  ;;  %v1108_v25 = vsub.f32 %v989_v57, %v1076_v55  ;;  %v1132_v6 = vsub.f32 %v1029_v24, %v1076_v55  ;;  %v1987_v9 = vpop.f32.mrb[34].mxu0 }
 0x255   : > { %v1094_v29 = vmul.f32 1.442695, %v1085_v61  ;;  %v1118_v35 = vmul.f32 1.442695, %v1109_v12  ;;  %v1142_v22 = vmul.f32 1.442695, %v1133_v34  ;;  %v1079_v40 = vmax.f32 %v1071_v45, %v1987_v9 }
 0x256   : > { %v1092_v16 = vmul.f32 1.442695, %v1084_v48  ;;  %v1116_v44 = vmul.f32 1.442695, %v1108_v25  ;;  %v1039_v30 = vpop.f32.mrb[35].mxu0 }
 0x257   : > { %2226 = vpow2.f32 %v1094_v29  ;;  %v1087_v3 = vsub.f32 %v1963_v42, %v1079_v40  ;;  %v1111_v63 = vsub.f32 %v1975_v28, %v1079_v40  ;;  %v1135_v26 = vsub.f32 %v1987_v9, %v1079_v40 }
 0x258   : > { %2228 = vpow2.f32 %v1118_v35  ;;  %v1140_v60 = vmul.f32 1.442695, %v1132_v6  ;;  %v1078_v47 = vmax.f32 %v1070_v54, %v1039_v30  ;;  %v1990_v46 = vpop.f32.mrb[36].mxu0 }
 0x259   : > { %2230 = vpow2.f32 %v1142_v22  ;;  %v1098_v49 = vmul.f32 1.442695, %v1087_v3  ;;  %v1122_v57 = vmul.f32 1.442695, %v1111_v63  ;;  %v1049_v55 = vpop.f32.mrb[37].mxu0  ;;  %v1081_v61 = vmax.f32 %v1073_v59, %v1990_v46 }
 0x25a   : > { %2232 = vpow2.f32 %v1092_v16  ;;  %v1086_v51 = vsub.f32 %v959_v32, %v1078_v47  ;;  %v1110_v43 = vsub.f32 %v999_v13, %v1078_v47  ;;  %v1134_v24 = vsub.f32 %v1039_v30, %v1078_v47 }
 0x25b   : > { %2234 = vpow2.f32 %v1116_v44  ;;  %v1146_v45 = vmul.f32 1.442695, %v1135_v26  ;;  %v1080_v12 = vmax.f32 %v1072_v0, %v1049_v55  ;;  %v1089_v54 = vsub.f32 %v3042_v1, %v1081_v61 }
 0x25c   : > { %2236 = vpow2.f32 %v1140_v60  ;;  %v1096_v42 = vmul.f32 1.442695, %v1086_v51  ;;  %v1120_v40 = vmul.f32 1.442695, %v1110_v43  ;;  %v1144_v28 = vmul.f32 1.442695, %v1134_v24 }
 0x25d   : > { %2238 = vpow2.f32 %v1098_v49  ;;  %v1113_v22 = vsub.f32 %v3050_v52, %v1081_v61  ;;  %v1137_v3 = vsub.f32 %v1990_v46, %v1081_v61  ;;  %v1993_v63 = vpop.f32.mrb[38].mxu0  ;;  %v1088_v16 = vsub.f32 %v3044_v10, %v1080_v12 }
 0x25e   : > { %2240 = vpow2.f32 %v1122_v57  ;;  %v1112_v32 = vsub.f32 %v3054_v15, %v1080_v12  ;;  %v1136_v44 = vsub.f32 %v1049_v55, %v1080_v12  ;;  %v1059_v26 = vpop.f32.mrb[39].mxu0  ;;  %v1102_v13 = vmul.f32 1.442695, %v1089_v54 }
 0x25f   : > { %2242 = vpow2.f32 %v1146_v45  ;;  %v1126_v59 = vmul.f32 1.442695, %v1113_v22  ;;  %v1150_v34 = vmul.f32 1.442695, %v1137_v3  ;;  %v1083_v1 = vmax.f32 %v1075_v41, %v1993_v63 }
 0x260   : > { %2244 = vpow2.f32 %v1096_v42  ;;  %v1082_v48 = vmax.f32 %v1074_v21, %v1059_v26  ;;  %v1100_v25 = vmul.f32 1.442695, %v1088_v16  ;;  %v1124_v6 = vmul.f32 1.442695, %v1112_v32 }
 0x261   : > { %v3070_v0 = vpop.eup %2226  ;;  %2246 = vpow2.f32 %v1120_v40  ;;  %v1091_v15 = vsub.f32 %v3046_v56, %v1083_v1  ;;  %v1115_v29 = vsub.f32 %v3058_v38, %v1083_v1  ;;  %v1139_v30 = vsub.f32 %v1993_v63, %v1083_v1 }
 0x262   : > { %v2229_v52 = vpop.eup %2228  ;;  %2248 = vpow2.f32 %v1144_v28  ;;  %v1090_v60 = vsub.f32 %v3048_v58, %v1082_v48  ;;  %v1114_v41 = vsub.f32 %v3062_v19, %v1082_v48  ;;  %v1148_v46 = vmul.f32 1.442695, %v1136_v44 }
 0x263   : > { %v2231_v9 = vpop.eup %2230  ;;  %v1157_v10 = vadd.f32 %v2229_v52, %v3070_v0  ;;  %2250 = vpow2.f32 %v1102_v13  ;;  %v1106_v43 = vmul.f32 1.442695, %v1091_v15  ;;  %v1138_v56 = vsub.f32 %v1059_v26, %v1082_v48 }
 0x264   : > { %v2233_v35 = vpop.eup %2232  ;;  %2252 = vpow2.f32 %v1126_v59  ;;  %v1130_v55 = vmul.f32 1.442695, %v1115_v29  ;;  %v1154_v19 = vmul.f32 1.442695, %v1139_v30  ;;  %v1104_v40 = vmul.f32 1.442695, %v1090_v60 }
 0x265   : > { %v2235_v21 = vpop.eup %2234  ;;  %v1165_v47 = vadd.f32 %v2231_v9, %v1157_v10  ;;  %2254 = vpow2.f32 %v1150_v34  ;;  %v1128_v3 = vmul.f32 1.442695, %v1114_v41  ;;  %v1152_v32 = vmul.f32 1.442695, %v1138_v56  ;;  %v1509_v29 = vld [vmem:[#allocation5 + $0x10] sm:$0xff]  ;;  %v1510_v30 = vld [vmem:[#allocation5 + $0x18] sm:$0xff] }
 0x266   : > { %v2237_v49 = vpop.eup %2236  ;;  %v1156_v57 = vadd.f32 %v2235_v21, %v2233_v35  ;;  %2256 = vpow2.f32 %v1100_v25 }
 0x267   : > { %v2239_v51 = vpop.eup %2238  ;;  %2258 = vrcp.f32 %v1165_v47 }
 0x268   : > { %v2241_v24 = vpop.eup %2240  ;;  %v1164_v38 = vadd.f32 %v2237_v49, %v1156_v57  ;;  %2260 = vpow2.f32 %v1124_v6 }
 0x269   : > { %v2243_v45 = vpop.eup %2242  ;;  %v1159_v61 = vadd.f32 %v2241_v24, %v2239_v51  ;;  %2262 = vpow2.f32 %v1148_v46 }
 0x26a   : > { %v2245_v58 = vpop.eup %2244  ;;  %2264 = vrcp.f32 %v1164_v38  ;;  %v2128_v38 = vpack.c.bf16 %v1510_v30, %v1509_v29 }
 0x26b   : > { %v2247_v12 = vpop.eup %2246  ;;  %v1167_v42 = vadd.f32 %v2243_v45, %v1159_v61  ;;  %2266 = vpow2.f32 %v1106_v43 }
 0x26c   : > { %v2249_v28 = vpop.eup %2248  ;;  %v1158_v54 = vadd.f32 %v2247_v12, %v2245_v58  ;;  %2268 = vpow2.f32 %v1130_v55 }
 0x26d   : > { %v2251_v22 = vpop.eup %2250  ;;  %2270 = vrcp.f32 %v1167_v42 }
 0x26e   : > { %v2253_v63 = vpop.eup %2252  ;;  %v1166_v16 = vadd.f32 %v2249_v28, %v1158_v54  ;;  %2272 = vpow2.f32 %v1154_v19 }
 0x26f   : > { %v2255_v44 = vpop.eup %2254  ;;  %v1161_v26 = vadd.f32 %v2253_v63, %v2251_v22  ;;  %2274 = vpow2.f32 %v1104_v40 }
 0x270   : > { %v2257_v13 = vpop.eup %2256  ;;  %2276 = vrcp.f32 %v1166_v16 }
 0x271   : > { %v2259_v59 = vpop.eup %2258  ;;  %v1169_v34 = vadd.f32 %v2255_v44, %v1161_v26  ;;  %2278 = vpow2.f32 %v1128_v3 }
 0x272   : > { %v2261_v1 = vpop.eup %2260  ;;  %2280 = vpow2.f32 %v1152_v32  ;;  %v1181_v48 = vmul.f32 %v2259_v59, %v3070_v0  ;;  %v3078_v25 = vmul.f32 %v2259_v59, %v2229_v52  ;;  %v3080_v6 = vmul.f32 %v2259_v59, %v2231_v9 }
 0x273   : > { %v2263_v10 = vpop.eup %2262  ;;  %2282 = vrcp.f32 %v1169_v34  ;;  %v1160_v15 = vadd.f32 %v2261_v1, %v2257_v13 }
 0x274   : > { %v2265_v60 = vpop.eup %2264 }
 0x275   : > { %v2267_v41 = vpop.eup %2266  ;;  %v1168_v47 = vadd.f32 %v2263_v10, %v1160_v15  ;;  %v1180_v46 = vmul.f32 %v2265_v60, %v2233_v35  ;;  %v1188_v57 = vmul.f32 %v2265_v60, %v2235_v21  ;;  %v1196_v43 = vmul.f32 %v2265_v60, %v2237_v49 }
 0x276   : > { %v2269_v56 = vpop.eup %2268 }
 0x277   : > { %v2271_v55 = vpop.eup %2270  ;;  %2284 = vrcp.f32 %v1168_v47  ;;  %v1163_v0 = vadd.f32 %v2269_v56, %v2267_v41  ;;  %1996 = vmatprep.mubr.msk.f32.mxu1 %vm1205_vm4, %v1180_v46 }
 0x278   : > { %v2273_v52 = vpop.eup %2272  ;;  %1997 = vmatmul.mubr.msk.f32.vlgmr.msra.gmra.mrb[8].mxu1 %vm1205_vm4, %v1181_v48  ;;  %v1183_v9 = vmul.f32 %v2271_v55, %v2239_v51  ;;  %v1191_v61 = vmul.f32 %v2271_v55, %v2241_v24  ;;  %v1199_v19 = vmul.f32 %v2271_v55, %v2243_v45  ;;  %v1520_v55 = vld [vmem:[#allocation5 + $0x68] sm:$0xff] }
 0x279   : > { %v2275_v42 = vpop.eup %2274  ;;  %v1171_v40 = vadd.f32 %v2273_v52, %v1163_v0  ;;  %2127 = vmatpush3.bf16.msra.mxu1 %v3039_v36 }
 0x27a   : > { %v2277_v35 = vpop.eup %2276  ;;  %2129 = vmatprep.subr.bf16.mxu1 %v2128_v38 }
 0x27b   : > { %v2279_v21 = vpop.eup %2278  ;;  %2286 = vrcp.f32 %v1171_v40  ;;  %v1182_v49 = vmul.f32 %v2277_v35, %v2245_v58  ;;  %v1190_v54 = vmul.f32 %v2277_v35, %v2247_v12  ;;  %v1198_v3 = vmul.f32 %v2277_v35, %v2249_v28 }
 0x27c   : > { %v2281_v16 = vpop.eup %2280  ;;  %v1162_v32 = vadd.f32 %v2279_v21, %v2275_v42  ;;  %v811_v40 = vmul.f32 %v2944_v2, %v2733_v4  ;;  %v815_v4 = vmul.f32 %v2997_v53, %v2744_v11 }
 0x27d   : > { %v2283_v26 = vpop.eup %2282  ;;  %1999 = vmatprep.mubr.msk.f32.mxu1 %vm1205_vm4, %v1182_v49  ;;  %2131 = vmatpush3.bf16.msra.mxu1 %v2128_v38  ;;  %v1519_v38 = vld [vmem:[#allocation5 + $0x60] sm:$0xff] }
 0x27e   : > { %v1170_v51 = vadd.f32 %v2281_v16, %v1162_v32  ;;  %2000 = vmatmul.mubr.msk.f32.gmra.mrb[10].mxu1 %vm1205_vm4, %v1183_v9  ;;  %v1185_v24 = vmul.f32 %v2283_v26, %v2251_v22  ;;  %v1193_v45 = vmul.f32 %v2283_v26, %v2253_v63  ;;  %v1201_v59 = vmul.f32 %v2283_v26, %v2255_v44  ;;  %v1511_v22 = vld [vmem:[#allocation5 + $0x20] sm:$0xff]  ;;  %v1512_v63 = vld [vmem:[#allocation5 + $0x28] sm:$0xff]  ;;  %v1522_v9 = vld [vmem:[#allocation5 + $0x78] sm:$0xff] }
 0x27f   : > { %v2132_v44 = vpack.c.bf16 %v1512_v63, %v1511_v22  ;;  %v2148_v0 = vpack.c.bf16 %v1520_v55, %v1519_v38  ;;  %v3288_v38 = vld [vmem:[#allocation17_spill] sm:$0xff] }
 0x280   : > { %2288 = vrcp.f32 %v1170_v51 }
 0x281   : > { %v2285_v36 = vpop.eup %2284  ;;  %2133 = vmatprep.subr.bf16.mxu1 %v2132_v44 }
 0x282   : > { %v1184_v34 = vmul.f32 %v2285_v36, %v2257_v13  ;;  %v1192_v48 = vmul.f32 %v2285_v36, %v2261_v1  ;;  %v1200_v15 = vmul.f32 %v2285_v36, %v2263_v10  ;;  %2135 = vmatpush3.bf16.msra.mxu1 %v2132_v44  ;;  %v1513_v13 = vld [vmem:[#allocation5 + $0x30] sm:$0xff]  ;;  %v1514_v1 = vld [vmem:[#allocation5 + $0x38] sm:$0xff]  ;;  %v1516_v10 = vld [vmem:[#allocation5 + $0x48] sm:$0xff] }
 0x284   : > { %2002 = vmatprep.mubr.msk.f32.mxu1 %vm1205_vm4, %v1184_v34 }
 0x285   : > { %v2287_v58 = vpop.eup %2286  ;;  %2003 = vmatmul.mubr.msk.f32.gmra.mrb[12].mxu1 %vm1205_vm4, %v1185_v24 }
 0x286   : > { %v1187_v12 = vmul.f32 %v2287_v58, %v2267_v41  ;;  %v1195_v28 = vmul.f32 %v2287_v58, %v2269_v56  ;;  %v1203_v29 = vmul.f32 %v2287_v58, %v2273_v52  ;;  %v1521_v52 = vld [vmem:[#allocation5 + $0x70] sm:$0xff] }
 0x28a   : > { %v2289_v30 = vpop.eup %2288 }
 0x28b   : > { %v1186_v60 = vmul.f32 %v2289_v30, %v2275_v42  ;;  %v1194_v47 = vmul.f32 %v2289_v30, %v2279_v21  ;;  %v1202_v46 = vmul.f32 %v2289_v30, %v2281_v16  ;;  %v813_v16 = vmul.f32 %v2969_v31, %v2735_v5 }
 0x28c   : > { %v817_v5 = vmul.f32 %v3008_v39, %v2757_v18  ;;  %v3281_v39 = vld [vmem:[#allocation19_spill] sm:$0xff] }
 0x28d   : > { %2005 = vmatprep.mubr.msk.f32.mxu1 %vm1205_vm4, %v1186_v60 }
 0x28e   : > { %2006 = vmatmul.mubr.msk.f32.gmra.mrb[14].mxu1 %vm1205_vm4, %v1187_v12 }
 0x28f   : > { %2008 = vmatprep.mubr.msk.f32.mxu1 %vm1205_vm4, %v1188_v57  ;;  %v1517_v57 = vld [vmem:[#allocation5 + $0x50] sm:$0xff] }
 0x292   : > { %2009 = vmatmul.mubr.msk.f32.gmra.mrb[16].mxu1 %vm1205_vm4, %v3078_v25  ;;  %v2136_v25 = vpack.c.bf16 %v1514_v1, %v1513_v13  ;;  %v3284_v1 = vld [vmem:[#allocation26_spill] sm:$0xff] }
 0x293   : > { %2011 = vmatprep.mubr.msk.f32.mxu1 %vm1205_vm4, %v1190_v54  ;;  %v814_v54 = vmul.f32 %v2960_v17, %v2739_v8  ;;  %v818_v8 = vmul.f32 %v3003_v37, %v2759_v20  ;;  %v3280_v20 = vld [vmem:[#allocation23_spill] sm:$0xff] }
 0x294   : > { %2137 = vmatprep.subr.bf16.mxu1 %v2136_v25 }
 0x295   : > { %2139 = vmatpush3.bf16.msra.mxu1 %v2136_v25 }
 0x296   : > { %2012 = vmatmul.mubr.msk.f32.gmra.mrb[18].mxu1 %vm1205_vm4, %v1191_v61  ;;  %v2152_v61 = vpack.c.bf16 %v1522_v9, %v1521_v52 }
 0x297   : > { %2014 = vmatprep.mubr.msk.f32.mxu1 %vm1205_vm4, %v1192_v48 }
 0x29a   : > { %2015 = vmatmul.mubr.msk.f32.gmra.mrb[20].mxu1 %vm1205_vm4, %v1193_v45 }
 0x29b   : > { %2017 = vmatprep.mubr.msk.f32.mxu1 %vm1205_vm4, %v1194_v47  ;;  %v3282_v47 = vld [vmem:[#allocation20_spill] sm:$0xff] }
 0x29e   : > { %2018 = vmatmul.mubr.msk.f32.gmra.mrb[22].mxu1 %vm1205_vm4, %v1195_v28 }
 0x29f   : > { %2020 = vmatprep.mubr.msk.f32.mxu1 %vm1205_vm4, %v1196_v43  ;;  %v1518_v43 = vld [vmem:[#allocation5 + $0x58] sm:$0xff] }
 0x2a0   : > { %v2144_v56 = vpack.c.bf16 %v1518_v43, %v1517_v57 }
 0x2a2   : > { %2021 = vmatmul.mubr.msk.f32.gmra.mrb[24].mxu1 %vm1205_vm4, %v3080_v6  ;;  %v1515_v6 = vld [vmem:[#allocation5 + $0x40] sm:$0xff] }
 0x2a3   : > { %2023 = vmatprep.mubr.msk.f32.mxu1 %vm1205_vm4, %v1198_v3  ;;  %v2140_v41 = vpack.c.bf16 %v1516_v10, %v1515_v6  ;;  %v3285_v6 = vld [vmem:[#allocation15_spill] sm:$0xff]  ;;  %v3286_v10 = vld [vmem:[#allocation30_spill] sm:$0xff] }
 0x2a5   : > { %2141 = vmatprep.subr.bf16.mxu1 %v2140_v41 }
 0x2a6   : > { %2024 = vmatmul.mubr.msk.f32.gmra.mrb[26].mxu1 %vm1205_vm4, %v1199_v19  ;;  %v812_v19 = vmul.f32 %v2803_v50, %v2737_v7  ;;  %v816_v7 = vmul.f32 %v2973_v23, %v2750_v14 }
 0x2a7   : > { %2026 = vmatprep.mubr.msk.f32.mxu1 %vm1205_vm4, %v1200_v15  ;;  %2143 = vmatpush3.bf16.msra.mxu1 %v2140_v41  ;;  %v836_v41 = vmul.f32 %v3286_v10, %v3285_v6 }
 0x2a8   : > { %2145 = vmatprep.subr.bf16.mxu1 %v2144_v56 }
 0x2aa   : > { %2027 = vmatmul.mubr.msk.f32.gmra.mrb[28].mxu1 %vm1205_vm4, %v1201_v59 }
 0x2ab   : > { %2029 = vmatprep.mubr.msk.f32.mxu1 %vm1205_vm4, %v1202_v46  ;;  %2147 = vmatpush3.bf16.msra.mxu1 %v2144_v56  ;;  %v3287_v56 = vld [vmem:[#allocation14_spill] sm:$0xff] }
 0x2ac   : > { %2149 = vmatprep.subr.bf16.mxu1 %v2148_v0  ;;  %v835_v55 = vmul.f32 %v3288_v38, %v3287_v56 }
 0x2ae   : > { %2030 = vmatmul.mubr.msk.f32.gmra.mrb[30].mxu1 %vm1205_vm4, %v1203_v29 }
 0x2af   : > { %2151 = vmatpush3.bf16.msra.mxu1 %v2148_v0 }
 0x2b0   : > { %2153 = vmatprep.subr.bf16.mxu1 %v2152_v61 }
 0x2b3   : > { %2155 = vmatpush3.bf16.msra.mxu1 %v2152_v61 }
 0x34b   : > { %v1998_v42 = vpop.f32.mrb[8].mxu1 }
 0x34c   : > { %v1468_v35 = vmul.f32 %v1998_v42, %v812_v19  ;;  %v1348_v21 = vpop.f32.mrb[9].mxu1  ;;  %v3289_v19 = vld [vmem:[#allocation18_spill] sm:$0xff]  ;;  %v3290_v42 = vld [vmem:[#allocation31_spill] sm:$0xff] }
 0x34d   : > { %v1467_v49 = vmul.f32 %v1348_v21, %v811_v40  ;;  %v838_v40 = vmul.f32 %v3290_v42, %v3289_v19 }
 0x351   : > { %v2001_v3 = vpop.f32.mrb[10].mxu1 }
 0x352   : > { %v1470_v32 = vmul.f32 %v2001_v3, %v814_v54  ;;  %v1358_v26 = vpop.f32.mrb[11].mxu1  ;;  %v3292_v54 = vld [vmem:[#allocation32_spill] sm:$0xff] }
 0x353   : > { %v1469_v51 = vmul.f32 %v1358_v26, %v813_v16 }
 0x358   : > { %v2004_v50 = vpop.f32.mrb[12].mxu1 }
 0x359   : > { %v1472_v2 = vmul.f32 %v2004_v50, %v816_v7  ;;  %v1368_v24 = vpop.f32.mrb[13].mxu1  ;;  %v3294_v7 = vld [vmem:[#allocation27_spill] sm:$0xff] }
 0x35a   : > { %v1471_v45 = vmul.f32 %v1368_v24, %v815_v4  ;;  %v3296_v24 = vld [vmem:[#allocation25_spill] sm:$0xff] }
 0x361   : > { %v2007_v17 = vpop.f32.mrb[14].mxu1 }
 0x362   : > { %v1474_v31 = vmul.f32 %v2007_v17, %v818_v8  ;;  %v1378_v59 = vpop.f32.mrb[15].mxu1 }
 0x363   : > { %v1473_v36 = vmul.f32 %v1378_v59, %v817_v5 }
 0x365   : > { %v2010_v34 = vpop.f32.mrb[16].mxu1 }
 0x366   : > { %v1476_v14 = vmul.f32 %v2010_v34, %v2770_v27  ;;  %v1388_v23 = vpop.f32.mrb[17].mxu1 }
 0x367   : > { %v1475_v48 = vmul.f32 %v1388_v23, %v2780_v33  ;;  %v3283_v33 = vld [vmem:[#allocation24_spill] sm:$0xff]  ;;  %v3297_v23 = vld [vmem:[#allocation29_spill] sm:$0xff] }
 0x368   : > { %v1484_v11 = vadd.f32 %v1476_v14, %v1468_v35 }
 0x369   : > { %v1483_v53 = vadd.f32 %v1475_v48, %v1467_v49  ;;  %v2013_v15 = vpop.f32.mrb[18].mxu1  ;;  %v3291_v49 = vld [vmem:[#allocation16_spill] sm:$0xff] }
 0x36a   : > { %v1478_v58 = vmul.f32 %v2013_v15, %v2831_v62  ;;  %v1398_v12 = vpop.f32.mrb[19].mxu1  ;;  %v837_v3 = vmul.f32 %v3292_v54, %v3291_v49 }
 0x36b   : > { %v1477_v37 = vmul.f32 %v1398_v12, %v3280_v20  ;;  %v1795_v20 = vld [vmem:[%s3208_s4] ss:$0 sm:$0xff] }
 0x36c   : > { %v1486_v28 = vadd.f32 %v1478_v58, %v1470_v32 }
 0x36d   : > { %v1485_v29 = vadd.f32 %v1477_v37, %v1469_v51  ;;  %v2016_v18 = vpop.f32.mrb[20].mxu1  ;;  %v3293_v51 = vld [vmem:[#allocation22_spill] sm:$0xff] }
 0x36e   : > { %v1480_v30 = vmul.f32 %v2016_v18, %v3281_v39  ;;  %v1408_v60 = vpop.f32.mrb[21].mxu1  ;;  %v840_v50 = vmul.f32 %v3294_v7, %v3293_v51 }
 0x36f   : > { %v1479_v46 = vmul.f32 %v1408_v60, %v3282_v47 }
 0x370   : > { %v1488_v27 = vadd.f32 %v1480_v30, %v1472_v2  ;;  %v3295_v2 = vld [vmem:[#allocation21_spill] sm:$0xff] }
 0x371   : > { %v1487_v22 = vadd.f32 %v1479_v46, %v1471_v45  ;;  %v2019_v63 = vpop.f32.mrb[22].mxu1  ;;  %v839_v45 = vmul.f32 %v3296_v24, %v3295_v2 }
 0x372   : > { %v1482_v44 = vmul.f32 %v2019_v63, %v3283_v33  ;;  %v1418_v13 = vpop.f32.mrb[23].mxu1 }
 0x373   : > { %v1481_v25 = vmul.f32 %v1418_v13, %v3284_v1 }
 0x374   : > { %v1490_v62 = vadd.f32 %v1482_v44, %v1474_v31 }
 0x375   : > { %v1489_v57 = vadd.f32 %v1481_v25, %v1473_v36  ;;  %v2022_v43 = vpop.f32.mrb[24].mxu1 }
 0x376   : > { %v1492_v0 = vmul.f32 %v2022_v43, %v836_v41  ;;  %v1428_v52 = vpop.f32.mrb[25].mxu1 }
 0x377   : > { %v1491_v9 = vmul.f32 %v1428_v52, %v835_v55 }
 0x378   : > { %v1500_v61 = vadd.f32 %v1492_v0, %v1484_v11 }
 0x379   : > { %v1499_v35 = vadd.f32 %v1491_v9, %v1483_v53  ;;  %v2025_v21 = vpop.f32.mrb[26].mxu1  ;;  %v3298_v53 = vld [vmem:[#allocation28_spill] sm:$0xff] }
 0x37a   : > { %v1494_v16 = vmul.f32 %v2025_v21, %v838_v40  ;;  %v1438_v32 = vpop.f32.mrb[27].mxu1 }
 0x37b   : > { %v1493_v26 = vmul.f32 %v1438_v32, %v837_v3  ;;  %2064 = vmatprep.mubr.f32.mxu1 %v1499_v35 }
 0x37c   : > { %v1502_v4 = vadd.f32 %v1494_v16, %v1486_v28  ;;  %2065 = vmatmul.mubr.f32.vlgmr.msra.gmra.mrb[32].mxu1 %v1500_v61 }
 0x37d   : > { %v1501_v8 = vadd.f32 %v1493_v26, %v1485_v29  ;;  %v2028_v17 = vpop.f32.mrb[28].mxu1 }
 0x37e   : > { %v1496_v5 = vmul.f32 %v2028_v17, %v840_v50  ;;  %v1448_v31 = vpop.f32.mrb[29].mxu1 }
 0x37f   : > { %v1495_v59 = vmul.f32 %v1448_v31, %v839_v45  ;;  %2067 = vmatprep.mubr.f32.mxu1 %v1501_v8 }
 0x380   : > { %v1504_v36 = vadd.f32 %v1496_v5, %v1488_v27  ;;  %2068 = vmatmul.mubr.f32.gmra.mrb[34].mxu1 %v1502_v4 }
 0x381   : > { %v1503_v34 = vadd.f32 %v1495_v59, %v1487_v22  ;;  %v2031_v14 = vpop.f32.mrb[30].mxu1 }
 0x382   : > { %v1498_v48 = vmul.f32 %v2031_v14, %v3297_v23  ;;  %v1458_v11 = vpop.f32.mrb[31].mxu1 }
 0x383   : > { %v1497_v15 = vmul.f32 %v1458_v11, %v3298_v53  ;;  %2070 = vmatprep.mubr.f32.mxu1 %v1503_v34 }
 0x384   : > { %v1506_v58 = vadd.f32 %v1498_v48, %v1490_v62  ;;  %2071 = vmatmul.mubr.f32.gmra.mrb[36].mxu1 %v1504_v36 }
 0x385   : > { %v1505_v12 = vadd.f32 %v1497_v15, %v1489_v57 }
 0x387   : > { %2073 = vmatprep.mubr.f32.mxu1 %v1505_v12 }
 0x388   : > { %2074 = vmatmul.mubr.f32.gmra.mrb[38].mxu1 %v1506_v58 }
 0x44f   : > { %v2066_v37 = vpop.f32.mrb[32].mxu1 }
 0x450   : > { %v1602_v28 = vadd.f32 %v2066_v37, %v1795_v20  ;;  %v1596_v29 = vpop.f32.mrb[33].mxu1 }
 0x451   : > { %v1597_v18 = vadd.f32 %v1795_v20, %v1596_v29 }
 0x452   : > { %1636 = vst [vmem:[%s358_s26 + $0x8] sm:$0xff] %v1602_v28 }
 0x453   : > { %1635 = vst [vmem:[%s358_s26] sm:$0xff] %v1597_v18  ;;  %v2069_v39 = vpop.f32.mrb[34].mxu1 }
 0x454   : > { %v1612_v30 = vadd.f32 %v2069_v39, %v1795_v20  ;;  %v1606_v60 = vpop.f32.mrb[35].mxu1 }
 0x455   : > { %v1607_v47 = vadd.f32 %v1795_v20, %v1606_v60 }
 0x456   : > { %1638 = vst [vmem:[%s358_s26 + $0x18] sm:$0xff] %v1612_v30 }
 0x457   : > { %1637 = vst [vmem:[%s358_s26 + $0x10] sm:$0xff] %v1607_v47  ;;  %v2072_v46 = vpop.f32.mrb[36].mxu1 }
 0x458   : > { %v1622_v27 = vadd.f32 %v2072_v46, %v1795_v20  ;;  %v1616_v22 = vpop.f32.mrb[37].mxu1 }
 0x459   : > { %v1617_v63 = vadd.f32 %v1795_v20, %v1616_v22 }
 0x45a   : > { %1640 = vst [vmem:[%s358_s26 + $0x28] sm:$0xff] %v1622_v27 }
 0x45b   : > { %1639 = vst [vmem:[%s358_s26 + $0x20] sm:$0xff] %v1617_v63  ;;  %v2075_v33 = vpop.f32.mrb[38].mxu1 }
 0x45c   : > { %v1632_v44 = vadd.f32 %v2075_v33, %v1795_v20  ;;  %v1626_v13 = vpop.f32.mrb[39].mxu1 }
 0x45d   : > { %v1627_v1 = vadd.f32 %v1795_v20, %v1626_v13 }
 0x45e   : > { %1642 = vst [vmem:[%s358_s26 + $0x38] sm:$0xff] %v1632_v44 }
 0x45f   : > { %1641 = vst [vmem:[%s358_s26 + $0x30] sm:$0xff] %v1627_v1 }
 0x460   : > { %2359 = shalt.err (!%p2356_p11)
}
 0x461   : > { %s2360_s18 = scalar_lea.hbm %s3159_s22, 1024  ;;  %s2364_s24 = scalar_lea.hbm %s3213_s9, 4096 }
 0x462   : > { %p2361_p13 = scmp.ne.s32.totalorder %s3159_s22, %s2360_s18  ;;  %p2365_p6 = scmp.lt.u32.totalorder %s3159_s22, %s3213_s9 }
 0x463   : > { %p2366_p9 = scmp.lt.u32.totalorder %s2364_s24, %s2360_s18  ;;  %p2368_p10 = scmp.lt.u32.totalorder %s2360_s18, %s3159_s22 }
 0x464   : > { %p2362_p0 = pnand %p2361_p13, %p3299_p1 }
 0x465   : > { %p2367_p12 = por %p2366_p9, %p2365_p6 }
 0x466   : > { %p2363_p5 = pneg %p2362_p0 }
 0x467   : > { %p2369_p2 = por %p2368_p10, %p2367_p12 }
 0x469   : > { %p2370_p3 = pnand %p2369_p2, %p2363_p5 }
 0x46b   : > { %2373 = shalt.err (!%p2370_p3)
}
 0x46c   : > { %s2427_s14 = smov 128   ;;  %s2428_s16 = smov 8  }
 0x46d   : > { %2164 = dma.vmem_to_hbm [thread:$0]  (%p3299_p1), %s3154_s28, 1024, %s3159_s22, %s3163_s25, %s2427_s14, %s2427_s14, %s2428_s16  }
 0x46e PF: > { %p2181_p4 = scmp.ge.s32.totalorder %s2416_s12, 2  ;;  %s1673_s17 = sand.u32 1, %s2404_s30  }
 0x46f   : > { %p3300_p7 = scmp.ne.s32.totalorder %s3241_s20, 0  ;;  %s1674_s13 = scalar_lea.sflag [#allocation4], %s1673_s17 }
 0x471   : > { %p2174_p8 = pnand %p2181_p4, %p3300_p7 }
 0x473   : > { %2399 = dma.done.wait (!%p2174_p8), %s1674_s13, 1024  }
 0x474   : > { %2401 = vsyncadd (!%p2174_p8), %s1674_s13, 4294966272  ;;  %s3301_s12 = sld [smem:[#allocation12_spill]]  ;;  %s3302_s23 = sld [smem:[#allocation11_spill]] }
 0x475   : > { %s3303_s11 = sld [smem:[#allocation13_spill]]  ;;  %s3304_s30 = smov %s2408_s10 }
 0x47a   : > { %p21_p11 = scmp.ge.s32.totalorder %s3301_s12, 6   ;;  %s3305_s10 = smov %s3302_s23 }
 0x47c   :  { %23 = sbr.rel (!%p21_p11) target bundleno = 5 (0x5), region = 100 }
 0x483   :  { %1679 = vsyncpa [#allocation3], 1 }
 0x484   :  { %1681 = vsyncpa [#allocation3 + $0x1], 1 }
 0x485   :  { %1682 = vsyncpa [#allocation6], 1 }
 0x486   :  { %1683 = vsyncpa [#allocation4], 1 }
 0x487   :  { %1685 = vsyncpa [#allocation4 + $0x1], 1 }

</bundles_post_ra>
